<compile_context>
chip_gen: v7x
topology: tpu7x:2x2x1
jax: 0.10.0
libtpu: 0.0.40
codegen_flags: <defaults>
</compile_context>

<pallas_src>
import functools

import jax
import jax.numpy as jnp
from jax import lax
from jax.experimental import pallas as pl
from jax.experimental.pallas import tpu as pltpu  # noqa: F401  (TPU backend import)


LEAKY_SLOPE = 0.2   # GATConv default negative_slope
NEG_BIG = -1e30     # mask value for non-edges / non-members


# ---------------------------------------------------------------------------
# Fused kernel
# ---------------------------------------------------------------------------
def _gat_layer(adj, x, w_bf16, wa_dst, wa_src, b):
    """Dense single-head GATConv + ReLU.  adj[i, j] = 1 iff edge j->i (incl. self-loop).

    wa_dst / wa_src are the wrapper-precomputed W @ att_* vectors in *input* space, so
    the attention scores depend only on x and run concurrently with the X@W matmul.
    """
    # scores (f32, VPU+XLU / one tiny MXU matvec that does not wait on h)
    s_dst = jnp.sum(x * wa_dst, axis=1, keepdims=True)                      # (N, 1)
    s_src = lax.dot_general(wa_src, x, (((1,), (1,)), ((), ())),
                            preferred_element_type=jnp.float32)             # (1, N)
    # main projection on the MXU, bf16 inputs, f32 accumulation
    h = jnp.dot(x.astype(jnp.bfloat16), w_bf16,
                preferred_element_type=jnp.float32)                         # (N, F)

    e = s_dst + s_src                                                       # (N, N)
    e = jnp.where(e > 0, e, LEAKY_SLOPE * e)                                # leaky_relu
    e = jnp.where(adj > 0.5, e, NEG_BIG)                                    # mask non-edges
    e = e - jnp.max(e, axis=1, keepdims=True)                               # stable softmax
    p = jnp.where(adj > 0.5, jnp.exp(e), 0.0)
    inv = pl.reciprocal(jnp.sum(p, axis=1, keepdims=True), approx=True)     # EUP slot
    alpha = p * inv                                                         # row softmax

    out = jnp.dot(alpha.astype(jnp.bfloat16), h.astype(jnp.bfloat16),
                  preferred_element_type=jnp.float32) + b                   # (N, F)
    return jnp.maximum(out, 0.0)                                            # ReLU


def _gat1_fused_kernel(adj_d_ref, x_d_ref, w1_ref, adj_e_ref, x_e_ref, w3_ref,
                       vec_ref, pool_mask_ref,
                       xc_ref, xpool_ref, xe_ref,
                       *, num_graphs, f_in, f_in_e, f_out):
    # vec_ref rows: 0=wa_dst1  1=wa_src1  2=b1  3=wa_dst3  4=wa_src3  5=b3  (static slices)

    # ---- drug graph: GATConv1 + ReLU ----
    h = _gat_layer(adj_d_ref[...], x_d_ref[...], w1_ref[...],
                   vec_ref[0:1, :f_in], vec_ref[1:2, :f_in], vec_ref[2:3, :f_out])

    # ---- global max pool per graph, built in vregs (single full-block store) ----
    m = pool_mask_ref[...]                                                  # (N, G)
    rows = []
    for g in range(num_graphs):                                             # G small & static
        col = m[:, g:g + 1]                                                 # (N, 1) VPU bcast
        rows.append(jnp.max(jnp.where(col > 0.5, h, NEG_BIG),
                            axis=0, keepdims=True))
    x_pool = jnp.concatenate(rows, axis=0)                                  # (G, F) in vregs
    xpool_ref[...] = x_pool

    # ---- entity graph: GATConv3 + ReLU ----
    he = _gat_layer(adj_e_ref[...], x_e_ref[...], w3_ref[...],
                    vec_ref[3:4, :f_in_e], vec_ref[4:5, :f_in_e], vec_ref[5:6, :f_out])
    xe_ref[...] = he

    # ---- xc = x_pool @ x_e.T ; entity dim padded to a lane multiple -> dense store ----
    xc_ref[...] = lax.dot_general(x_pool.astype(jnp.bfloat16),
                                  he.astype(jnp.bfloat16),
                                  (((1,), (1,)), ((), ())),
                                  preferred_element_type=jnp.float32)       # (G, Ne_pad)


# ---------------------------------------------------------------------------
# Wrapper: lane/node padding, W@att folding, small-vector packing, single pallas_call
# ---------------------------------------------------------------------------
def _round_up(n, m):
    return ((n + m - 1) // m) * m


def _pad_axis(a, target, axis):
    pad = target - a.shape[axis]
    if pad <= 0:
        return a
    widths = [(0, 0)] * a.ndim
    widths[axis] = (0, pad)
    return jnp.pad(a, widths)


def gat1_forward(params, x, adj, pool_mask_ng, x_e, adj_e, *, output_dim):
    """Fused GAT1 forward.  pool_mask_ng: (N, G) one-hot graph membership."""
    n, n_e = x.shape[0], x_e.shape[0]
    g = pool_mask_ng.shape[1]

    f_in = _round_up(x.shape[1], 128)
    f_in_e = _round_up(x_e.shape[1], 128)
    f_out = _round_up(output_dim, 128)
    n_e_pad = _round_up(n_e, 128)           # lane-dense xc store + better MXU row fill
    vec_w = max(f_in, f_in_e, f_out)

    # Zero lane/node padding never changes the sliced result: padded W / att / bias
    # columns are zero, and phantom entity rows (self-loop only, zero features) produce
    # rows/columns that are sliced off below.
    x_p = _pad_axis(x, f_in, 1)
    x_e_p = _pad_axis(_pad_axis(x_e, f_in_e, 1), n_e_pad, 0)
    # phantom rows get a self-loop so their softmax denominator is nonzero (no 0/0 NaN)
    adj_e_p = jnp.maximum(_pad_axis(_pad_axis(adj_e, n_e_pad, 0), n_e_pad, 1),
                          jnp.eye(n_e_pad, dtype=jnp.float32))

    w1 = _pad_axis(_pad_axis(params["w1"], f_in, 0), f_out, 1).astype(jnp.bfloat16)
    w3 = _pad_axis(_pad_axis(params["w3"], f_in_e, 0), f_out, 1).astype(jnp.bfloat16)

    # Fold W @ att into input-space vectors (f32): s = x @ (W att^T).  Algebraically
    # identical to att . (x @ W) but breaks the serial h -> score dependence.
    def _row(v, width):
        return _pad_axis(v.reshape(1, -1).astype(jnp.float32), width, 1)

    vec = jnp.concatenate([
        _row(params["w1"] @ params["att_dst1"].reshape(-1, 1), vec_w),
        _row(params["w1"] @ params["att_src1"].reshape(-1, 1), vec_w),
        _row(params["b1"], vec_w),
        _row(params["w3"] @ params["att_dst3"].reshape(-1, 1), vec_w),
        _row(params["w3"] @ params["att_src3"].reshape(-1, 1), vec_w),
        _row(params["b3"], vec_w),
        jnp.zeros((2, vec_w), jnp.float32),
    ], axis=0)                                                              # (8, vec_w)

    flops = 2 * (n * f_in * f_out + 2 * n * f_in + n * n * f_out
                 + n_e_pad * f_in_e * f_out + 2 * n_e_pad * f_in_e
                 + n_e_pad * n_e_pad * f_out + g * n_e_pad * f_out)
    bytes_accessed = (4 * (n * n + n * f_in + n * g + n_e_pad * n_e_pad
                           + n_e_pad * f_in_e + 8 * vec_w
                           + g * n_e_pad + g * f_out + n_e_pad * f_out)
                      + 2 * (f_in * f_out + f_in_e * f_out))

    kernel = functools.partial(_gat1_fused_kernel, num_graphs=g,
                               f_in=f_in, f_in_e=f_in_e, f_out=f_out)
    xc_p, x_pool_p, x_e_out_p = pl.pallas_call(
        kernel,
        out_shape=(
            jax.ShapeDtypeStruct((g, n_e_pad), jnp.float32),
            jax.ShapeDtypeStruct((g, f_out), jnp.float32),
            jax.ShapeDtypeStruct((n_e_pad, f_out), jnp.float32),
        ),
        cost_estimate=pl.CostEstimate(
            flops=flops,
            transcendentals=n * n + n_e_pad * n_e_pad + n + n_e_pad,
            bytes_accessed=bytes_accessed,
        ),
    )(adj, x_p, w1, adj_e_p, x_e_p, w3, vec, pool_mask_ng)

    # slice the lane / node padding back off
    return (xc_p[:, :n_e],
            x_pool_p[:, :output_dim],
            x_e_out_p[:n_e, :output_dim])


# ---------------------------------------------------------------------------
# Glue (plain JAX): dense adjacency mask, params, pure-JAX reference
# ---------------------------------------------------------------------------
def gat_adj_mask(edge_index, num_nodes):
    """Binary dense adjacency with self-loops: M[i, j] = 1 iff edge j->i or i == j."""
    src, dst = edge_index[0], edge_index[1]
    m = jnp.zeros((num_nodes, num_nodes), jnp.float32).at[dst, src].set(1.0)
    return jnp.maximum(m, jnp.eye(num_nodes, dtype=jnp.float32))


def init_params(key, input_dim=109, input_dim_e=243, output_dim=200):
    ks = jax.random.split(key, 8)

    def glorot(k, shape):
        limit = jnp.sqrt(6.0 / (shape[0] + shape[1]))
        return jax.random.uniform(k, shape, jnp.float32, -limit, limit)

    return {
        "w1": glorot(ks[0], (input_dim, output_dim)),
        "att_src1": glorot(ks[1], (1, output_dim)),
        "att_dst1": glorot(ks[2], (1, output_dim)),
        "b1": 0.01 * jax.random.normal(ks[3], (output_dim,), jnp.float32),
        "w3": glorot(ks[4], (input_dim_e, output_dim)),
        "att_src3": glorot(ks[5], (1, output_dim)),
        "att_dst3": glorot(ks[6], (1, output_dim)),
        "b3": 0.01 * jax.random.normal(ks[7], (output_dim,), jnp.float32),
        # fc_g1..fc_g4 and DiagLayer exist in __init__ but are unused under the
        # default forward flags (DF=False, not_FC=True), so they are omitted.
    }


def gat1_forward_ref(params, x, adj, pool_mask_ng, x_e, adj_e):
    """Pure-JAX f32 reference of the same dense GAT1 forward (correctness check)."""
    def gat(adj_m, xx, w, asrc, adst, b):
        h = xx @ w
        sd = h @ adst.reshape(-1, 1)                 # (N, 1)
        ss = (h @ asrc.reshape(-1, 1)).T             # (1, N)
        e = jax.nn.leaky_relu(sd + ss, negative_slope=LEAKY_SLOPE)
        e = jnp.where(adj_m > 0.5, e, -jnp.inf)
        a = jax.nn.softmax(e, axis=1)
        return jax.nn.relu(a @ h + b.reshape(1, -1))

    h = gat(adj, x, params["w1"], params["att_src1"], params["att_dst1"], params["b1"])
    x_pool = jnp.max(jnp.where(pool_mask_ng.T[:, :, None] > 0.5, h[None], -jnp.inf), axis=1)
    he = gat(adj_e, x_e, params["w3"], params["att_src3"], params["att_dst3"], params["b3"])
    return x_pool @ he.T, x_pool, he


def ring_edges(node_ids):
    """Symmetric ring edges over the given node ids."""
    n = len(node_ids)
    src, dst = [], []
    for i in range(n):
        j = (i + 1) % n
        src += [node_ids[i], node_ids[j]]
        dst += [node_ids[j], node_ids[i]]
    return src, dst


# ---------------------------------------------------------------------------
if __name__ == "__main__":
    key = jax.random.PRNGKey(0)
    k_x, k_xe, k_p = jax.random.split(key, 3)

    # drug graph batch: 2 graphs x 8 nodes = 16 nodes, 109-dim node features
    num_nodes, input_dim, num_graphs = 16, 109, 2
    # entity graph: 8 nodes, 243-dim features; GAT output dim 200
    num_nodes_e, input_dim_e, output_dim = 8, 243, 200

    x = jax.random.normal(k_x, (num_nodes, input_dim), jnp.float32)
    batch = jnp.array([0] * 8 + [1] * 8, jnp.int32)
    s0, d0 = ring_edges(list(range(0, 8)))
    s1, d1 = ring_edges(list(range(8, 16)))
    edge_index = jnp.array([s0 + s1, d0 + d1], jnp.int32)            # (2, 32)

    x_e = jax.random.normal(k_xe, (num_nodes_e, input_dim_e), jnp.float32)
    se, de = ring_edges(list(range(num_nodes_e)))
    edge_index_e = jnp.array([se, de], jnp.int32)                    # (2, 16)

    # dense binary adjacency (with self-loops) + (N, G) one-hot pooling mask
    adj = gat_adj_mask(edge_index, num_nodes)
    adj_e = gat_adj_mask(edge_index_e, num_nodes_e)
    pool_mask = (batch[:, None] == jnp.arange(num_graphs)[None, :]).astype(jnp.float32)

    params = init_params(k_p, input_dim=input_dim, input_dim_e=input_dim_e,
                         output_dim=output_dim)

    fwd = jax.jit(functools.partial(gat1_forward, output_dim=output_dim))
    xc, x_out, xe_out = fwd(params, x, adj, pool_mask, x_e, adj_e)
    jax.block_until_ready((xc, x_out, xe_out))

    assert xc.shape == (num_graphs, num_nodes_e)
    assert x_out.shape == (num_graphs, output_dim)
    assert xe_out.shape == (num_nodes_e, output_dim)

    # correctness check against the pure-JAX f32 reference.
    # Tolerances account for bf16 MXU inputs + approx reciprocal in the kernel.
    xc_r, x_r, xe_r = gat1_forward_ref(params, x, adj, pool_mask, x_e, adj_e)
    assert jnp.allclose(xc, xc_r, rtol=2e-2, atol=2e-2)
    assert jnp.allclose(x_out, x_r, rtol=2e-2, atol=2e-2)
    assert jnp.allclose(xe_out, xe_r, rtol=2e-2, atol=2e-2)

    print("KERNEL_OK")
</pallas_src>

<mosaic_0001>
module attributes {stable_mosaic.version = 11 : i64} {
  func.func @_gat1_fused_kernel(%arg0: memref<16x16xf32, #tpu.memory_space<vmem>>, %arg1: memref<16x128xf32, #tpu.memory_space<vmem>>, %arg2: memref<128x256xbf16, #tpu.memory_space<vmem>>, %arg3: memref<128x128xf32, #tpu.memory_space<vmem>>, %arg4: memref<128x256xf32, #tpu.memory_space<vmem>>, %arg5: memref<256x256xbf16, #tpu.memory_space<vmem>>, %arg6: memref<8x256xf32, #tpu.memory_space<vmem>>, %arg7: memref<16x2xf32, #tpu.memory_space<vmem>>, %arg8: memref<2x128xf32, #tpu.memory_space<vmem>>, %arg9: memref<2x256xf32, #tpu.memory_space<vmem>>, %arg10: memref<128x256xf32, #tpu.memory_space<vmem>>) attributes {dimension_semantics = [], scalar_prefetch = 0 : i64, scratch_operands = 0 : i64, tpu.core_type = #tpu.core_type<tc>} {
    %c0 = arith.constant 0 : index
    %c0_0 = arith.constant 0 : index
    %0 = vector.load %arg0[%c0, %c0_0] : memref<16x16xf32, #tpu.memory_space<vmem>>, vector<16x16xf32>
    %c0_1 = arith.constant 0 : index
    %c0_2 = arith.constant 0 : index
    %1 = vector.load %arg1[%c0_1, %c0_2] : memref<16x128xf32, #tpu.memory_space<vmem>>, vector<16x128xf32>
    %c0_3 = arith.constant 0 : index
    %c0_4 = arith.constant 0 : index
    %2 = vector.load %arg2[%c0_3, %c0_4] : memref<128x256xbf16, #tpu.memory_space<vmem>>, vector<128x256xbf16>
    %c0_5 = arith.constant 0 : index
    %c0_6 = arith.constant 0 : index
    %3 = vector.load %arg6[%c0_5, %c0_6] : memref<8x256xf32, #tpu.memory_space<vmem>>, vector<1x128xf32>
    %c1 = arith.constant 1 : index
    %c0_7 = arith.constant 0 : index
    %4 = vector.load %arg6[%c1, %c0_7] : memref<8x256xf32, #tpu.memory_space<vmem>>, vector<1x128xf32>
    %c2 = arith.constant 2 : index
    %c0_8 = arith.constant 0 : index
    %5 = vector.load %arg6[%c2, %c0_8] : memref<8x256xf32, #tpu.memory_space<vmem>>, vector<1x256xf32>
    %6 = vector.broadcast %3 : vector<1x128xf32> to vector<16x128xf32>
    %7 = arith.mulf %1, %6 : vector<16x128xf32>
    %cst = arith.constant dense<0.000000e+00> : vector<16xf32>
    %8 = vector.multi_reduction <add>, %7, %cst [1] : vector<16x128xf32> to vector<16xf32>
    %9 = vector.shape_cast %8 : vector<16xf32> to vector<16x1xf32>
    %cst_9 = arith.constant dense<0.000000e+00> : vector<1x16xf32>
    %10 = tpu.matmul %4, %1, %cst_9 {dimension_numbers = #tpu.dot_dimension_numbers<[1], [1], [0], [0], [0, 0, 1, 0], [], []>} : vector<1x128xf32>, vector<16x128xf32>, vector<1x16xf32> -> vector<1x16xf32>
    %11 = arith.truncf %1 : vector<16x128xf32> to vector<16x128xbf16>
    %cst_10 = arith.constant dense<0.000000e+00> : vector<16x256xf32>
    %12 = tpu.matmul %11, %2, %cst_10 {dimension_numbers = #tpu.dot_dimension_numbers<[1], [0], [0], [1], [0, 0, 1, 1], [], []>} : vector<16x128xbf16>, vector<128x256xbf16>, vector<16x256xf32> -> vector<16x256xf32>
    %13 = vector.broadcast %9 : vector<16x1xf32> to vector<16x16xf32>
    %14 = vector.broadcast %10 : vector<1x16xf32> to vector<16x16xf32>
    %15 = arith.addf %13, %14 : vector<16x16xf32>
    %cst_11 = arith.constant 0.000000e+00 : f32
    %16 = vector.broadcast %cst_11 : f32 to vector<16x16xf32>
    %17 = arith.cmpf ogt, %15, %16 : vector<16x16xf32>
    %cst_12 = arith.constant 2.000000e-01 : f32
    %18 = vector.broadcast %cst_12 : f32 to vector<16x16xf32>
    %19 = arith.mulf %18, %15 : vector<16x16xf32>
    %20 = arith.select %17, %15, %19 : vector<16x16xi1>, vector<16x16xf32>
    %cst_13 = arith.constant 5.000000e-01 : f32
    %21 = vector.broadcast %cst_13 : f32 to vector<16x16xf32>
    %22 = arith.cmpf ogt, %0, %21 : vector<16x16xf32>
    %cst_14 = arith.constant -1.000000e+30 : f32
    %23 = vector.broadcast %cst_14 : f32 to vector<16x16xf32>
    %24 = arith.select %22, %20, %23 : vector<16x16xi1>, vector<16x16xf32>
    %cst_15 = arith.constant dense<0xFF800000> : vector<16xf32>
    %25 = vector.multi_reduction <maximumf>, %24, %cst_15 [1] : vector<16x16xf32> to vector<16xf32>
    %26 = vector.shape_cast %25 : vector<16xf32> to vector<16x1xf32>
    %27 = vector.broadcast %26 : vector<16x1xf32> to vector<16x16xf32>
    %28 = arith.subf %24, %27 : vector<16x16xf32>
    %cst_16 = arith.constant 5.000000e-01 : f32
    %29 = vector.broadcast %cst_16 : f32 to vector<16x16xf32>
    %30 = arith.cmpf ogt, %0, %29 : vector<16x16xf32>
    %31 = math.exp %28 : vector<16x16xf32>
    %cst_17 = arith.constant 0.000000e+00 : f32
    %32 = vector.broadcast %cst_17 : f32 to vector<16x16xf32>
    %33 = arith.select %30, %31, %32 : vector<16x16xi1>, vector<16x16xf32>
    %cst_18 = arith.constant dense<0.000000e+00> : vector<16xf32>
    %34 = vector.multi_reduction <add>, %33, %cst_18 [1] : vector<16x16xf32> to vector<16xf32>
    %35 = vector.shape_cast %34 : vector<16xf32> to vector<16x1xf32>
    %36 = tpu.reciprocal %35 {approx = true} : vector<16x1xf32> -> vector<16x1xf32>
    %37 = vector.broadcast %36 : vector<16x1xf32> to vector<16x16xf32>
    %38 = arith.mulf %33, %37 : vector<16x16xf32>
    %39 = arith.truncf %38 : vector<16x16xf32> to vector<16x16xbf16>
    %40 = arith.truncf %12 : vector<16x256xf32> to vector<16x256xbf16>
    %cst_19 = arith.constant dense<0.000000e+00> : vector<16x256xf32>
    %41 = tpu.matmul %39, %40, %cst_19 {dimension_numbers = #tpu.dot_dimension_numbers<[1], [0], [0], [1], [0, 0, 1, 1], [], []>} : vector<16x16xbf16>, vector<16x256xbf16>, vector<16x256xf32> -> vector<16x256xf32>
    %42 = vector.broadcast %5 : vector<1x256xf32> to vector<16x256xf32>
    %43 = arith.addf %41, %42 : vector<16x256xf32>
    %cst_20 = arith.constant 0.000000e+00 : f32
    %44 = vector.broadcast %cst_20 : f32 to vector<16x256xf32>
    %45 = arith.maximumf %43, %44 : vector<16x256xf32>
    %c0_21 = arith.constant 0 : index
    %c0_22 = arith.constant 0 : index
    %46 = vector.load %arg7[%c0_21, %c0_22] : memref<16x2xf32, #tpu.memory_space<vmem>>, vector<16x2xf32>
    %47 = vector.extract_strided_slice %46 {offsets = [0, 0], sizes = [16, 1], strides = [1, 1]} : vector<16x2xf32> to vector<16x1xf32>
    %cst_23 = arith.constant 5.000000e-01 : f32
    %48 = vector.broadcast %cst_23 : f32 to vector<16x1xf32>
    %49 = arith.cmpf ogt, %47, %48 : vector<16x1xf32>
    %cst_24 = arith.constant -1.000000e+30 : f32
    %50 = vector.shape_cast %49 : vector<16x1xi1> to vector<16x1xi1>
    %51 = vector.broadcast %50 : vector<16x1xi1> to vector<16x256xi1>
    %52 = vector.broadcast %cst_24 : f32 to vector<16x256xf32>
    %53 = arith.select %51, %45, %52 : vector<16x256xi1>, vector<16x256xf32>
    %cst_25 = arith.constant dense<0xFF800000> : vector<256xf32>
    %54 = vector.multi_reduction <maximumf>, %53, %cst_25 [0] : vector<16x256xf32> to vector<256xf32>
    %55 = vector.shape_cast %54 : vector<256xf32> to vector<1x256xf32>
    %56 = vector.extract_strided_slice %46 {offsets = [0, 1], sizes = [16, 1], strides = [1, 1]} : vector<16x2xf32> to vector<16x1xf32>
    %cst_26 = arith.constant 5.000000e-01 : f32
    %57 = vector.broadcast %cst_26 : f32 to vector<16x1xf32>
    %58 = arith.cmpf ogt, %56, %57 : vector<16x1xf32>
    %cst_27 = arith.constant -1.000000e+30 : f32
    %59 = vector.shape_cast %58 : vector<16x1xi1> to vector<16x1xi1>
    %60 = vector.broadcast %59 : vector<16x1xi1> to vector<16x256xi1>
    %61 = vector.broadcast %cst_27 : f32 to vector<16x256xf32>
    %62 = arith.select %60, %45, %61 : vector<16x256xi1>, vector<16x256xf32>
    %cst_28 = arith.constant dense<0xFF800000> : vector<256xf32>
    %63 = vector.multi_reduction <maximumf>, %62, %cst_28 [0] : vector<16x256xf32> to vector<256xf32>
    %64 = vector.shape_cast %63 : vector<256xf32> to vector<1x256xf32>
    %65 = tpu.concatenate %55, %64 in 0 : vector<1x256xf32>, vector<1x256xf32> -> vector<2x256xf32>
    %c0_29 = arith.constant 0 : index
    %c0_30 = arith.constant 0 : index
    %66 = vector.load %arg9[%c0_29, %c0_30] : memref<2x256xf32, #tpu.memory_space<vmem>>, vector<2x256xf32>
    tpu.vector_store %arg9[%c0_29, %c0_30], %65 {strides = array<i32>} : memref<2x256xf32, #tpu.memory_space<vmem>>, vector<2x256xf32>,
    %c0_31 = arith.constant 0 : index
    %c0_32 = arith.constant 0 : index
    %67 = vector.load %arg3[%c0_31, %c0_32] : memref<128x128xf32, #tpu.memory_space<vmem>>, vector<128x128xf32>
    %c0_33 = arith.constant 0 : index
    %c0_34 = arith.constant 0 : index
    %68 = vector.load %arg4[%c0_33, %c0_34] : memref<128x256xf32, #tpu.memory_space<vmem>>, vector<128x256xf32>
    %c0_35 = arith.constant 0 : index
    %c0_36 = arith.constant 0 : index
    %69 = vector.load %arg5[%c0_35, %c0_36] : memref<256x256xbf16, #tpu.memory_space<vmem>>, vector<256x256xbf16>
    %c3 = arith.constant 3 : index
    %c0_37 = arith.constant 0 : index
    %70 = vector.load %arg6[%c3, %c0_37] : memref<8x256xf32, #tpu.memory_space<vmem>>, vector<1x256xf32>
    %c4 = arith.constant 4 : index
    %c0_38 = arith.constant 0 : index
    %71 = vector.load %arg6[%c4, %c0_38] : memref<8x256xf32, #tpu.memory_space<vmem>>, vector<1x256xf32>
    %c5 = arith.constant 5 : index
    %c0_39 = arith.constant 0 : index
    %72 = vector.load %arg6[%c5, %c0_39] : memref<8x256xf32, #tpu.memory_space<vmem>>, vector<1x256xf32>
    %73 = vector.broadcast %70 : vector<1x256xf32> to vector<128x256xf32>
    %74 = arith.mulf %68, %73 : vector<128x256xf32>
    %cst_40 = arith.constant dense<0.000000e+00> : vector<128xf32>
    %75 = vector.multi_reduction <add>, %74, %cst_40 [1] : vector<128x256xf32> to vector<128xf32>
    %76 = vector.shape_cast %75 : vector<128xf32> to vector<128x1xf32>
    %cst_41 = arith.constant dense<0.000000e+00> : vector<1x128xf32>
    %77 = tpu.matmul %71, %68, %cst_41 {dimension_numbers = #tpu.dot_dimension_numbers<[1], [1], [0], [0], [0, 0, 1, 0], [], []>} : vector<1x256xf32>, vector<128x256xf32>, vector<1x128xf32> -> vector<1x128xf32>
    %78 = arith.truncf %68 : vector<128x256xf32> to vector<128x256xbf16>
    %cst_42 = arith.constant dense<0.000000e+00> : vector<128x256xf32>
    %79 = tpu.matmul %78, %69, %cst_42 {dimension_numbers = #tpu.dot_dimension_numbers<[1], [0], [0], [1], [0, 0, 1, 1], [], []>} : vector<128x256xbf16>, vector<256x256xbf16>, vector<128x256xf32> -> vector<128x256xf32>
    %80 = vector.broadcast %76 : vector<128x1xf32> to vector<128x128xf32>
    %81 = vector.broadcast %77 : vector<1x128xf32> to vector<128x128xf32>
    %82 = arith.addf %80, %81 : vector<128x128xf32>
    %cst_43 = arith.constant 0.000000e+00 : f32
    %83 = vector.broadcast %cst_43 : f32 to vector<128x128xf32>
    %84 = arith.cmpf ogt, %82, %83 : vector<128x128xf32>
    %cst_44 = arith.constant 2.000000e-01 : f32
    %85 = vector.broadcast %cst_44 : f32 to vector<128x128xf32>
    %86 = arith.mulf %85, %82 : vector<128x128xf32>
    %87 = arith.select %84, %82, %86 : vector<128x128xi1>, vector<128x128xf32>
    %cst_45 = arith.constant 5.000000e-01 : f32
    %88 = vector.broadcast %cst_45 : f32 to vector<128x128xf32>
    %89 = arith.cmpf ogt, %67, %88 : vector<128x128xf32>
    %cst_46 = arith.constant -1.000000e+30 : f32
    %90 = vector.broadcast %cst_46 : f32 to vector<128x128xf32>
    %91 = arith.select %89, %87, %90 : vector<128x128xi1>, vector<128x128xf32>
    %cst_47 = arith.constant dense<0xFF800000> : vector<128xf32>
    %92 = vector.multi_reduction <maximumf>, %91, %cst_47 [1] : vector<128x128xf32> to vector<128xf32>
    %93 = vector.shape_cast %92 : vector<128xf32> to vector<128x1xf32>
    %94 = vector.broadcast %93 : vector<128x1xf32> to vector<128x128xf32>
    %95 = arith.subf %91, %94 : vector<128x128xf32>
    %cst_48 = arith.constant 5.000000e-01 : f32
    %96 = vector.broadcast %cst_48 : f32 to vector<128x128xf32>
    %97 = arith.cmpf ogt, %67, %96 : vector<128x128xf32>
    %98 = math.exp %95 : vector<128x128xf32>
    %cst_49 = arith.constant 0.000000e+00 : f32
    %99 = vector.broadcast %cst_49 : f32 to vector<128x128xf32>
    %100 = arith.select %97, %98, %99 : vector<128x128xi1>, vector<128x128xf32>
    %cst_50 = arith.constant dense<0.000000e+00> : vector<128xf32>
    %101 = vector.multi_reduction <add>, %100, %cst_50 [1] : vector<128x128xf32> to vector<128xf32>
    %102 = vector.shape_cast %101 : vector<128xf32> to vector<128x1xf32>
    %103 = tpu.reciprocal %102 {approx = true} : vector<128x1xf32> -> vector<128x1xf32>
    %104 = vector.broadcast %103 : vector<128x1xf32> to vector<128x128xf32>
    %105 = arith.mulf %100, %104 : vector<128x128xf32>
    %106 = arith.truncf %105 : vector<128x128xf32> to vector<128x128xbf16>
    %107 = arith.truncf %79 : vector<128x256xf32> to vector<128x256xbf16>
    %cst_51 = arith.constant dense<0.000000e+00> : vector<128x256xf32>
    %108 = tpu.matmul %106, %107, %cst_51 {dimension_numbers = #tpu.dot_dimension_numbers<[1], [0], [0], [1], [0, 0, 1, 1], [], []>} : vector<128x128xbf16>, vector<128x256xbf16>, vector<128x256xf32> -> vector<128x256xf32>
    %109 = vector.broadcast %72 : vector<1x256xf32> to vector<128x256xf32>
    %110 = arith.addf %108, %109 : vector<128x256xf32>
    %cst_52 = arith.constant 0.000000e+00 : f32
    %111 = vector.broadcast %cst_52 : f32 to vector<128x256xf32>
    %112 = arith.maximumf %110, %111 : vector<128x256xf32>
    %c0_53 = arith.constant 0 : index
    %c0_54 = arith.constant 0 : index
    %113 = vector.load %arg10[%c0_53, %c0_54] : memref<128x256xf32, #tpu.memory_space<vmem>>, vector<128x256xf32>
    tpu.vector_store %arg10[%c0_53, %c0_54], %112 {strides = array<i32>} : memref<128x256xf32, #tpu.memory_space<vmem>>, vector<128x256xf32>,
    %114 = arith.truncf %65 : vector<2x256xf32> to vector<2x256xbf16>
    %115 = arith.truncf %112 : vector<128x256xf32> to vector<128x256xbf16>
    %cst_55 = arith.constant dense<0.000000e+00> : vector<2x128xf32>
    %116 = tpu.matmul %114, %115, %cst_55 {dimension_numbers = #tpu.dot_dimension_numbers<[1], [1], [0], [0], [0, 0, 1, 0], [], []>} : vector<2x256xbf16>, vector<128x256xbf16>, vector<2x128xf32> -> vector<2x128xf32>
    %c0_56 = arith.constant 0 : index
    %c0_57 = arith.constant 0 : index
    %117 = vector.load %arg8[%c0_56, %c0_57] : memref<2x128xf32, #tpu.memory_space<vmem>>, vector<2x128xf32>
    tpu.vector_store %arg8[%c0_56, %c0_57], %116 {strides = array<i32>} : memref<2x128xf32, #tpu.memory_space<vmem>>, vector<2x128xf32>,
    return
  }
}

</mosaic_0001>

<bundles_post_ra>
// kernel: gat1_forward.1
= control target key start
LH: loop header
LB: loop body
LE: loop exit
PB: predicated region body
PF: predicated region fallthrough
CT: control target
= control target key end

     0   :  { %16 = vsyncpa [#allocation3], 0  ;;  %v1849_v2 = vmov 0.0|0.0   ;;  %vm1850_vm0 = vmmov 0   ;;  %v1851_v4 = vmov 0.0   ;;  %s2831_s0 = inlined_call_operand.vmem [shape: f32[16,16], index: 0, kind: input, shape index: {}]   ;;  %s2832_s1 = inlined_call_operand.vmem [shape: f32[16,128], index: 1, kind: input, shape index: {}]   ;;  %s2833_s2 = inlined_call_operand.vmem [shape: bf16[128,256], index: 2, kind: input, shape index: {}]   ;;  %s2834_s3 = inlined_call_operand.vmem [shape: f32[128,128], index: 3, kind: input, shape index: {}]   ;;  %s2835_s4 = inlined_call_operand.vmem [shape: f32[128,256], index: 4, kind: input, shape index: {}]   ;;  %s2836_s5 = inlined_call_operand.vmem [shape: bf16[256,256], index: 5, kind: input, shape index: {}]   ;;  %s2837_s6 = inlined_call_operand.vmem [shape: f32[8,256], index: 6, kind: input, shape index: {}]   ;;  %s2838_s7 = inlined_call_operand.vmem [shape: f32[16,2], index: 7, kind: input, shape index: {}]   ;;  %s2839_s8 = inlined_call_operand.hbm [shape: f32[2,128], index: 8, kind: output, shape index: {0}]   ;;  %s2840_s9 = inlined_call_operand.hbm [shape: f32[2,256], index: 9, kind: output, shape index: {1}]   ;;  %s2841_s10 = inlined_call_operand.vmem [shape: f32[128,256], index: 10, kind: output, shape index: {2}]  }
   0x1   :  { %v37_v0 = vld [vmem:[%s2832_s1] sm:$0xff]  ;;  %v38_v1 = vld [vmem:[%s2832_s1 + $0x8] sm:$0xff]  ;;  %1611 = vmatprep.subr.bf16.mxu0 %v1849_v2  ;;  %1608 = vmatprep.mubr.msk.f32.mxu0 %vm1850_vm0, %v1851_v4 }
   0x2   :  { %v1612_v3 = vpack.c.bf16 %v38_v1, %v37_v0  ;;  %v55_v5 = vld [vmem:[%s2837_s6] ss:$0 sm:$0xff]  ;;  %v56_v8 = vld [vmem:[%s2837_s6 + $0x1] ss:$0 sm:$0xff] }
   0x3   :  { %v59_v6 = vmul.f32 %v55_v5, %v37_v0  ;;  %v60_v7 = vmul.f32 %v55_v5, %v38_v1 }
   0x4   :  { %1613 = vmatpush3.bf16.xpose.msra.mxu0 %v1612_v3 }
   0x5   :  { %61 = vadd.xlane.f32.xlu0 %v59_v6 }
   0x9   :  { %63 = vadd.xlane.f32.xlu0 %v60_v7 }
   0xb   :  { %1609 = vmatmul.mubr.f32.vlgmr.msra.gmra.mrb[0].mxu0 %v56_v8 }
   0xc   :  { %17 = vsyncpa [#allocation5], 0  ;;  %v1657_v9 = vld [vmem:[%s2833_s2 + $0x4] ss:$8 sps:$4 sm:$0xff]   ;;  %v1659_v10 = vld [vmem:[%s2833_s2] ss:$8 sps:$4 sm:$0xff]   ;;  %v259_v26 = vlaneseq }
   0xd   :  { %v1660_v11 = vld [vmem:[%s2833_s2 + $0x14] ss:$8 sps:$4 sm:$0xff]   ;;  %216 = vmatprep.subr.bf16.mxu1 %v1657_v9  ;;  %v1662_v12 = vld [vmem:[%s2833_s2 + $0x10] ss:$8 sps:$4 sm:$0xff]   ;;  %v1663_v13 = vld [vmem:[%s2833_s2 + $0x24] ss:$8 sps:$4 sm:$0xff]  }
   0xe   :  { %217 = vmatpush1.bf16.msra.mxu1 %v1659_v10  ;;  %v2842_v14 = vmov 0   ;;  %v1665_v15 = vld [vmem:[%s2833_s2 + $0x20] ss:$8 sps:$4 sm:$0xff]   ;;  %v1666_v16 = vld [vmem:[%s2833_s2 + $0x34] ss:$8 sps:$4 sm:$0xff]   ;;  %v1975_v27 = vshrl.u32 %v259_v26, 7 }
   0xf   :  { %218 = vmatprep.subr.bf16.mxu1 %v1660_v11  ;;  %248 = vmatprep.mubr.bf16.mxu1 %v2842_v14  ;;  %v1668_v17 = vld [vmem:[%s2833_s2 + $0x30] ss:$8 sps:$4 sm:$0xff]   ;;  %v1669_v18 = vld [vmem:[%s2833_s2 + $0x44] ss:$8 sps:$4 sm:$0xff]   ;;  %v1671_v19 = vld [vmem:[%s2833_s2 + $0x40] ss:$8 sps:$4 sm:$0xff]  }
  0x10   :  { %349 = vmatprep.mubr.bf16.mxu0 %v2842_v14  ;;  %1654 = vset.pattern.permute.xlu1 %v2842_v14  ;;  %v1672_v20 = vld [vmem:[%s2833_s2 + $0x54] ss:$8 sps:$4 sm:$0xff]   ;;  %v1674_v21 = vld [vmem:[%s2833_s2 + $0x50] ss:$8 sps:$4 sm:$0xff]   ;;  %v1675_v22 = vld [vmem:[%s2833_s2 + $0x64] ss:$8 sps:$4 sm:$0xff]  }
  0x11   :  { %1653 = vset.pattern.permute.xlu0 %v2842_v14  ;;  %v1677_v23 = vld [vmem:[%s2833_s2 + $0x60] ss:$8 sps:$4 sm:$0xff]   ;;  %v1678_v24 = vld [vmem:[%s2833_s2 + $0x74] ss:$8 sps:$4 sm:$0xff]   ;;  %v1680_v25 = vld [vmem:[%s2833_s2 + $0x70] ss:$8 sps:$4 sm:$0xff]  }
  0x12   :  { %219 = vmatpush1.bf16.msra.mxu1 %v1662_v12  ;;  %v1978_v29 = vsub.s32 0, %v1975_v27  ;;  %v35_v34 = vld [vmem:[%s2831_s0] sm:$0xff]  ;;  %v36_v37 = vld [vmem:[%s2831_s0 + $0x8] sm:$0xff]  ;;  %vm275_vm4 = vcmask 130048   ;;  %v456_v1 = vld [vmem:[%s2835_s4 + $0x18] sm:$0xff]  ;;  %s1854_s21 = smov [#allocation4]  }
  0x13   :  { %220 = vmatprep.subr.bf16.mxu1 %v1663_v13  ;;  %vm271_vm1 = vcmp.gt.f32.partialorder %v35_v34, 0.5  ;;  %vm272_vm5 = vcmp.gt.f32.partialorder %v36_v37, 0.5  ;;  %v454_v0 = vld [vmem:[%s2835_s4 + $0x8] sm:$0xff]  ;;  %v459_v4 = vld [vmem:[%s2835_s4 + $0x30] sm:$0xff]  ;;  %v464_v7 = vld [vmem:[%s2835_s4 + $0x58] sm:$0xff]  ;;  %s1531_s22 = sshll.u32 %s1854_s21, 4  ;;  %s1532_s22 = int_to_ptr.vmem [resolvable:$true] %s1531_s22 }
  0x14   :  { %2854 = vst [vmem:[#allocation8_spill] sm:$0xff] %v1978_v29  ;;  %v1614_v2 = vpack.c.bf16 %v456_v1, %v454_v0  ;;  %v462_v6 = vld [vmem:[%s2835_s4 + $0x48] sm:$0xff]  ;;  %v461_v9 = vld [vmem:[%s2835_s4 + $0x40] sm:$0xff]  ;;  %v463_v10 = vld [vmem:[%s2835_s4 + $0x50] sm:$0xff]  ;;  %s1801_s23 = scalar_lea.vmem %s1532_s22, 64  ;;  %p1806_p1 = scmp.lt.s32.totalorder %s1532_s22, %s1532_s22 }
  0x15   :  { %v2021_v8 = vpack.c.bf16 %v464_v7, %v462_v6  ;;  %v2029_v11 = vpack.c.bf16 %v463_v10, %v461_v9  ;;  %v466_v12 = vld [vmem:[%s2835_s4 + $0x68] sm:$0xff]  ;;  %v468_v13 = vld [vmem:[%s2835_s4 + $0x78] sm:$0xff]  ;;  %v2105_v37 = vld [vmem:[%s2835_s4 + $0xd0] sm:$0xff]  ;;  %p1802_p0 = scmp.ne.s32.totalorder %s1532_s22, %s1801_s23  ;;  %p1807_p2 = scmp.lt.s32.totalorder %s1801_s23, %s1801_s23 }
  0x16   :  { %221 = vmatpush1.bf16.msra.mxu1 %v1665_v15  ;;  %v2037_v15 = vpack.c.bf16 %v468_v13, %v466_v12  ;;  %v2072_v26 = vld [vmem:[%s2835_s4 + $0xb8] sm:$0xff] }
  0x17   :  { %222 = vmatprep.subr.bf16.mxu1 %v1666_v16  ;;  %v465_v16 = vld [vmem:[%s2835_s4 + $0x60] sm:$0xff]  ;;  %v2093_v34 = vld [vmem:[%s2835_s4 + $0xd8] sm:$0xff]  ;;  %p1808_p3 = por %p1807_p2, %p1806_p1 }
  0x19   :  { %p1809_p4 = pnand %p1808_p3, %p1802_p0 }
  0x1a   :  { %223 = vmatpush1.bf16.msra.mxu1 %v1668_v17  ;;  %v467_v17 = vld [vmem:[%s2835_s4 + $0x70] sm:$0xff] }
  0x1b   :  { %224 = vmatprep.subr.bf16.mxu1 %v1669_v18  ;;  %v2045_v18 = vpack.c.bf16 %v467_v17, %v465_v16 }
  0x1e   :  { %225 = vmatpush1.bf16.msra.mxu1 %v1671_v19  ;;  %v470_v19 = vld [vmem:[%s2835_s4 + $0x88] sm:$0xff] }
  0x1f   :  { %226 = vmatprep.subr.bf16.mxu1 %v1672_v20  ;;  %v2053_v20 = vld [vmem:[%s2835_s4 + $0x98] sm:$0xff] }
  0x22   :  { %227 = vmatpush1.bf16.msra.mxu1 %v1674_v21  ;;  %v2056_v21 = vpack.c.bf16 %v2053_v20, %v470_v19 }
  0x23   :  { %228 = vmatprep.subr.bf16.mxu1 %v1675_v22  ;;  %v469_v22 = vld [vmem:[%s2835_s4 + $0x80] sm:$0xff] }
  0x26   :  { %229 = vmatpush1.bf16.msra.mxu1 %v1677_v23  ;;  %v471_v23 = vld [vmem:[%s2835_s4 + $0x90] sm:$0xff] }
  0x27   :  { %230 = vmatprep.subr.bf16.mxu1 %v1678_v24  ;;  %v2064_v24 = vpack.c.bf16 %v471_v23, %v469_v22 }
  0x2a   :  { %231 = vmatpush1.bf16.msra.mxu1 %v1680_v25  ;;  %v474_v25 = vld [vmem:[%s2835_s4 + $0xa8] sm:$0xff] }
  0x2d   :  { %249 = vmatmul.mubr.bf16.vlgmr.msra.gmra.mrb[0].mxu1 %v1612_v3  ;;  %v457_v3 = vld [vmem:[%s2835_s4 + $0x20] sm:$0xff] }
  0x2e   :  { %903 = vmatprep.mubr.bf16.mxu1 %v1614_v2  ;;  %v2013_v5 = vpack.c.bf16 %v459_v4, %v457_v3 }
  0x92   :  { %v62_v28 = vpop.xlane.xlu0 %61 }
  0x96   :  { %v64_v31 = vpop.xlane.xlu0 %63 }
  0xde   :  { %v131_v30 = vpop.f32.mrb[0].mxu0 }
  0xdf   :  { %v262_v32 = vrot.slane %v131_v30, %v1978_v29  ;;  %v1610_v33 = vpop.f32.mrb[1].mxu0  ;;  %v473_v30 = vld [vmem:[%s2835_s4 + $0xa0] sm:$0xff] }
  0xe0   :  { %v2088_v33 = vld [vmem:[%s2835_s4 + $0xc8] sm:$0xff] }
  0xe1   :  { %v263_v35 = vadd.f32 %v262_v32, %v62_v28  ;;  %v264_v36 = vadd.f32 %v262_v32, %v64_v31  ;;  %v2075_v28 = vpack.c.bf16 %v2072_v26, %v474_v25  ;;  %v475_v31 = vld [vmem:[%s2835_s4 + $0xb0] sm:$0xff] }
  0xe2   :  { %v2083_v32 = vpack.c.bf16 %v475_v31, %v473_v30 }
  0xe3   :  { %v268_v38 = vmul.f32 0.2, %v264_v36  ;;  %vm265_vm2 = vcmp.gt.f32.partialorder %v263_v35, 0.0  ;;  %v267_v39 = vmul.f32 0.2, %v263_v35  ;;  %vm266_vm3 = vcmp.gt.f32.partialorder %v264_v36, 0.0 }
  0xe4   :  { %2855 = vst [vmem:[#allocation9_spill] sm:$0xff] %v2075_v28  ;;  %2856 = vst [vmem:[#allocation10_spill] sm:$0xff] %v2083_v32 }
  0xe5   :  { %v269_v40 = vsel %vm265_vm2, %v263_v35, %v267_v39  ;;  %v270_v41 = vsel %vm266_vm3, %v264_v36, %v268_v38  ;;  %v2097_v35 = vpack.c.bf16 %v2093_v34, %v2088_v33  ;;  %v477_v36 = vld [vmem:[%s2835_s4 + $0xc0] sm:$0xff]  ;;  %v2113_v39 = vld [vmem:[%s2835_s4 + $0xe8] sm:$0xff] }
  0xe6   :  { %v273_v42 = vsel %vm271_vm1, %v269_v40, -1e+30  ;;  %v274_v44 = vsel %vm272_vm5, %v270_v41, -1e+30  ;;  %v2108_v38 = vpack.c.bf16 %v2105_v37, %v477_v36  ;;  %v2118_v40 = vld [vmem:[%s2835_s4 + $0xf8] sm:$0xff] }
  0xe7   :  { %v276_v43 = vsel %vm275_vm4, %v273_v42, -inf  ;;  %v279_v45 = vsel %vm275_vm4, %v274_v44, -inf  ;;  %2857 = vst [vmem:[#allocation11_spill] sm:$0xff] %v2097_v35  ;;  %v2122_v41 = vpack.c.bf16 %v2118_v40, %v2113_v39 }
  0xe8   :  { %277 = vmax.xlane.f32.xlu1 %v276_v43  ;;  %2858 = vst [vmem:[#allocation12_spill] sm:$0xff] %v2108_v38  ;;  %v2130_v43 = vld [vmem:[%s2835_s4 + $0xf0] sm:$0xff] }
  0xe9   :  { %2859 = vst [vmem:[#allocation13_spill] sm:$0xff] %v2122_v41 }
  0xec   :  { %280 = vmax.xlane.f32.xlu1 %v279_v45  ;;  %v1566_v45 = vld [vmem:[%s2837_s6 + $0x3] ss:$8 sm:$0x3] }
 0x100   :  { %v250_v46 = vpop.f32.mrb[0].mxu1 }
 0x101   :  { %v252_v59 = vpop.f32.mrb[1].mxu1 }
 0x102   :  { %v254_v60 = vpop.f32.mrb[2].mxu1 }
 0x103   :  { %v256_v61 = vpop.f32.mrb[3].mxu1  ;;  %v301_v63 = vpack.c.bf16 %v254_v60, %v250_v46  ;;  %v2139_v46 = vsub.s32 1, %v1975_v27  ;;  %v2161_v27 = vld [vmem:[%s2835_s4 + $0x38] sm:$0xff] }
 0x104   :  { %v302_v62 = vpack.c.bf16 %v256_v61, %v252_v59 }
 0x106   :  { %317 = vmatprep.subr.bf16.mxu0 %v302_v62 }
 0x107   :  { %318 = vmatpush1.bf16.msra.mxu0 %v301_v63 }
 0x108   :  { %1615 = vmatprep.subr.bf16.mxu0 %v1614_v2 }
 0x175   :  { %v278_v47 = vpop.xlane.xlu1 %277 }
 0x176   :  { %v282_v48 = vsub.f32 %v273_v42, %v278_v47  ;;  %v481_v42 = vld [vmem:[%s2835_s4 + $0xe0] sm:$0xff]  ;;  %v527_v47 = vrot.slane %v1566_v45, %v1978_v29 }
 0x178   :  { %v284_v49 = vmul.f32 1.442695, %v282_v48  ;;  %v531_v48 = vrot.slane %v1566_v45, %v2139_v46  ;;  %v540_v60 = vmul.f32 %v527_v47, %v459_v4  ;;  %v542_v45 = vmul.f32 %v527_v47, %v461_v9 }
 0x179   :  { %v281_v50 = vpop.xlane.xlu1 %280  ;;  %v546_v38 = vmul.f32 %v527_v47, %v465_v16  ;;  %v550_v28 = vmul.f32 %v527_v47, %v469_v22  ;;  %v560_v22 = vmul.f32 %v527_v47, %v2105_v37  ;;  %v1567_v37 = vld [vmem:[%s2837_s6 + $0x4] ss:$8 sm:$0x3] }
 0x17a   :  { %1729 = vpow2.f32 %v284_v49  ;;  %v283_v51 = vsub.f32 %v274_v44, %v281_v50  ;;  %v2133_v44 = vpack.c.bf16 %v2130_v43, %v481_v42  ;;  %v2146_v49 = vld [vmem:[%s2835_s4] sm:$0xff]  ;;  %v2151_v50 = vld [vmem:[%s2835_s4 + $0x10] sm:$0xff]  ;;  %v541_v61 = vmul.f32 %v531_v48, %v2161_v27 }
 0x17b   :  { %v543_v14 = vmul.f32 %v531_v48, %v462_v6  ;;  %v545_v41 = vmul.f32 %v531_v48, %v464_v7  ;;  %v547_v35 = vmul.f32 %v531_v48, %v466_v12  ;;  %v549_v4 = vmul.f32 %v531_v48, %v468_v13 }
 0x17c   :  { %v286_v52 = vmul.f32 1.442695, %v283_v51  ;;  %2860 = vst [vmem:[#allocation14_spill] sm:$0xff] %v2133_v44  ;;  %v2156_v51 = vld [vmem:[%s2835_s4 + $0x28] sm:$0xff]  ;;  %v575_v29 = vadd.f32 %v541_v61, %v540_v60  ;;  %v544_v44 = vmul.f32 %v527_v47, %v463_v10  ;;  %v552_v6 = vmul.f32 %v527_v47, %v471_v23  ;;  %v1686_v60 = vld [vmem:[%s2836_s5 + $0x14] ss:$8 sps:$4 sm:$0xff]  }
 0x17d   :  { %v539_v59 = vmul.f32 %v531_v48, %v2156_v51  ;;  %v584_v32 = vadd.f32 %v547_v35, %v546_v38  ;;  %v555_v10 = vmul.f32 %v531_v48, %v474_v25  ;;  %v556_v7 = vmul.f32 %v527_v47, %v475_v31  ;;  %v1684_v61 = vld [vmem:[%s2836_s5 + $0x10] ss:$8 sps:$4 sm:$0xff]  }
 0x17e   :  { %1731 = vpow2.f32 %v286_v52  ;;  %v534_v52 = vmul.f32 %v527_v47, %v2146_v49  ;;  %v558_v13 = vmul.f32 %v527_v47, %v477_v36  ;;  %v562_v25 = vmul.f32 %v527_v47, %v481_v42 }
 0x17f   :  { %v565_v31 = vmul.f32 %v531_v48, %v2118_v40  ;;  %v622_v42 = vrot.slane %v1567_v37, %v2139_v46 }
 0x184   :  { %v1730_v53 = vpop.eup %1729 }
 0x185   :  { %v1992_v54 = vsel %vm271_vm1, %v1730_v53, 0.0  ;;  %v535_v53 = vmul.f32 %v531_v48, %v454_v0  ;;  %v578_v0 = vadd.f32 %v543_v14, %v542_v45  ;;  %v1690_v45 = vld [vmem:[%s2836_s5 + $0x30] ss:$8 sps:$4 sm:$0xff]  }
 0x186   :  { %v290_v55 = vsel %vm275_vm4, %v1992_v54, 0.0 }
 0x187   :  { %291 = vadd.xlane.f32.xlu0 %v290_v55  ;;  %v536_v55 = vmul.f32 %v527_v47, %v2151_v50  ;;  %v566_v62 = vadd.f32 %v535_v53, %v534_v52  ;;  %v551_v52 = vmul.f32 %v531_v48, %v470_v19  ;;  %v553_v53 = vmul.f32 %v531_v48, %v2053_v20 }
 0x188   :  { %v1732_v56 = vpop.eup %1731  ;;  %v561_v20 = vmul.f32 %v531_v48, %v2093_v34 }
 0x189   :  { %v1997_v57 = vsel %vm272_vm5, %v1732_v56, 0.0  ;;  %v537_v56 = vmul.f32 %v531_v48, %v456_v1  ;;  %v581_v1 = vadd.f32 %v545_v41, %v544_v44  ;;  %v590_v14 = vadd.f32 %v551_v52, %v550_v28  ;;  %v1701_v52 = vld [vmem:[%s2836_s5 + $0x64] ss:$8 sps:$4 sm:$0xff]  }
 0x18a   :  { %v293_v58 = vsel %vm275_vm4, %v1997_v57, 0.0  ;;  %v593_v12 = vadd.f32 %v553_v53, %v552_v6  ;;  %v605_v28 = vadd.f32 %v561_v20, %v560_v22  ;;  %v2182_v41 = vpack.c.bf16 %v2151_v50, %v2146_v49  ;;  %v2865_v49 = vld [vmem:[#allocation13_spill] sm:$0xff]  ;;  %v2866_v50 = vld [vmem:[#allocation14_spill] sm:$0xff] }
 0x18b   :  { %294 = vadd.xlane.f32.xlu1 %v293_v58  ;;  %v538_v58 = vmul.f32 %v527_v47, %v457_v3  ;;  %v569_v63 = vadd.f32 %v537_v56, %v536_v55  ;;  %567 = vadd.xlane.f32.xlu0 %v566_v62  ;;  %v548_v3 = vmul.f32 %v527_v47, %v467_v17  ;;  %v2868_v56 = vmov 0   ;;  %v1689_v62 = vld [vmem:[%s2836_s5 + $0x24] ss:$8 sps:$4 sm:$0xff]   ;;  %v1702_v6 = vld [vmem:[%s2836_s5 + $0x70] ss:$8 sps:$4 sm:$0xff]  }
 0x18c   :  { %v554_v55 = vmul.f32 %v527_v47, %v473_v30  ;;  %v559_v17 = vmul.f32 %v531_v48, %v2088_v33  ;;  %v563_v30 = vmul.f32 %v531_v48, %v2113_v39  ;;  %v2187_v44 = vpack.c.bf16 %v2161_v27, %v2156_v51  ;;  %v2867_v51 = vld [vmem:[#allocation8_spill] sm:$0xff]  ;;  %v1704_v53 = vld [vmem:[%s2836_s5 + $0x74] ss:$8 sps:$4 sm:$0xff]   ;;  %v1720_v22 = vld [vmem:[%s2836_s5 + $0xd0] ss:$8 sps:$4 sm:$0xff]  }
 0x18d   :  { %v572_v2 = vadd.f32 %v539_v59, %v538_v58  ;;  %v587_v9 = vadd.f32 %v549_v4, %v548_v3  ;;  %v618_v27 = vrot.slane %v1567_v37, %v2867_v51  ;;  %v1681_v58 = vld [vmem:[%s2836_s5] ss:$8 sps:$4 sm:$0xff]   ;;  %v1683_v59 = vld [vmem:[%s2836_s5 + $0x4] ss:$8 sps:$4 sm:$0xff]   ;;  %v1698_v3 = vld [vmem:[%s2836_s5 + $0x54] ss:$8 sps:$4 sm:$0xff]  }
 0x18e   :  { %v596_v16 = vadd.f32 %v555_v10, %v554_v55  ;;  %v602_v23 = vadd.f32 %v559_v17, %v558_v13  ;;  %871 = vmatprep.subr.bf16.mxu1 %v1683_v59  ;;  %v1696_v4 = vld [vmem:[%s2836_s5 + $0x50] ss:$8 sps:$4 sm:$0xff]   ;;  %v1705_v55 = vld [vmem:[%s2836_s5 + $0x80] ss:$8 sps:$4 sm:$0xff]   ;;  %v1707_v10 = vld [vmem:[%s2836_s5 + $0x84] ss:$8 sps:$4 sm:$0xff]  }
 0x18f   :  { %570 = vadd.xlane.f32.xlu1 %v569_v63  ;;  %573 = vadd.xlane.f32.xlu0 %v572_v2  ;;  %v1687_v63 = vld [vmem:[%s2836_s5 + $0x20] ss:$8 sps:$4 sm:$0xff]   ;;  %v1692_v2 = vld [vmem:[%s2836_s5 + $0x34] ss:$8 sps:$4 sm:$0xff]  }
 0x190   :  { %872 = vmatpush1.bf16.msra.mxu1 %v1681_v58  ;;  %v1716_v13 = vld [vmem:[%s2836_s5 + $0xb4] ss:$8 sps:$4 sm:$0xff]   ;;  %v1717_v17 = vld [vmem:[%s2836_s5 + $0xc0] ss:$8 sps:$4 sm:$0xff]  }
 0x191   :  { %873 = vmatprep.subr.bf16.mxu1 %v1686_v60  ;;  %v1722_v20 = vld [vmem:[%s2836_s5 + $0xd4] ss:$8 sps:$4 sm:$0xff]  }
 0x193   :  { %576 = vadd.xlane.f32.xlu1 %v575_v29  ;;  %579 = vadd.xlane.f32.xlu0 %v578_v0  ;;  %v557_v29 = vmul.f32 %v531_v48, %v2072_v26  ;;  %v564_v26 = vmul.f32 %v527_v47, %v2130_v43  ;;  %v2863_v47 = vld [vmem:[#allocation11_spill] sm:$0xff]  ;;  %v2864_v48 = vld [vmem:[#allocation12_spill] sm:$0xff] }
 0x194   :  { %874 = vmatpush1.bf16.msra.mxu1 %v1684_v61  ;;  %v1695_v0 = vld [vmem:[%s2836_s5 + $0x44] ss:$8 sps:$4 sm:$0xff]  }
 0x195   :  { %v599_v19 = vadd.f32 %v557_v29, %v556_v7  ;;  %v611_v33 = vadd.f32 %v565_v31, %v564_v26  ;;  %875 = vmatprep.subr.bf16.mxu1 %v1689_v62  ;;  %v1708_v7 = vld [vmem:[%s2836_s5 + $0x90] ss:$8 sps:$4 sm:$0xff]   ;;  %v1713_v29 = vld [vmem:[%s2836_s5 + $0xa4] ss:$8 sps:$4 sm:$0xff]  }
 0x196   :  { %v2362_v62 = vld [vmem:[%s2834_s3 + $0x20] sm:$0xff] }
 0x197   :  { %582 = vadd.xlane.f32.xlu1 %v581_v1  ;;  %585 = vadd.xlane.f32.xlu0 %v584_v32  ;;  %v608_v32 = vadd.f32 %v563_v30, %v562_v25  ;;  %v1693_v1 = vld [vmem:[%s2836_s5 + $0x40] ss:$8 sps:$4 sm:$0xff]   ;;  %v1725_v25 = vld [vmem:[%s2836_s5 + $0xe4] ss:$8 sps:$4 sm:$0xff]   ;;  %v1726_v30 = vld [vmem:[%s2836_s5 + $0xf0] ss:$8 sps:$4 sm:$0xff]  }
 0x198   :  { %876 = vmatpush1.bf16.msra.mxu1 %v1687_v63  ;;  %v2367_v63 = vld [vmem:[%s2834_s3 + $0x28] sm:$0xff]  ;;  %vm1056_vm0 = vcmp.gt.f32.partialorder %v2362_v62, 0.5 }
 0x199   :  { %877 = vmatprep.subr.bf16.mxu1 %v1692_v2  ;;  %vm1057_vm1 = vcmp.gt.f32.partialorder %v2367_v63, 0.5 }
 0x19b   :  { %588 = vadd.xlane.f32.xlu1 %v587_v9  ;;  %591 = vadd.xlane.f32.xlu0 %v590_v14  ;;  %v1699_v9 = vld [vmem:[%s2836_s5 + $0x60] ss:$8 sps:$4 sm:$0xff]   ;;  %v1710_v14 = vld [vmem:[%s2836_s5 + $0x94] ss:$8 sps:$4 sm:$0xff]  }
 0x19c   :  { %878 = vmatpush1.bf16.msra.mxu1 %v1690_v45 }
 0x19d   :  { %879 = vmatprep.subr.bf16.mxu1 %v1695_v0 }
 0x19f   :  { %594 = vadd.xlane.f32.xlu1 %v593_v12  ;;  %597 = vadd.xlane.f32.xlu0 %v596_v16  ;;  %v1711_v12 = vld [vmem:[%s2836_s5 + $0xa0] ss:$8 sps:$4 sm:$0xff]   ;;  %v1714_v16 = vld [vmem:[%s2836_s5 + $0xb0] ss:$8 sps:$4 sm:$0xff]  }
 0x1a0   :  { %880 = vmatpush1.bf16.msra.mxu1 %v1693_v1 }
 0x1a1   :  { %881 = vmatprep.subr.bf16.mxu1 %v1698_v3 }
 0x1a3   :  { %600 = vadd.xlane.f32.xlu1 %v599_v19  ;;  %603 = vadd.xlane.f32.xlu0 %v602_v23  ;;  %v1719_v19 = vld [vmem:[%s2836_s5 + $0xc4] ss:$8 sps:$4 sm:$0xff]   ;;  %v1723_v23 = vld [vmem:[%s2836_s5 + $0xe0] ss:$8 sps:$4 sm:$0xff]  }
 0x1a4   :  { %882 = vmatpush1.bf16.msra.mxu1 %v1696_v4 }
 0x1a5   :  { %883 = vmatprep.subr.bf16.mxu1 %v1701_v52 }
 0x1a7   :  { %606 = vadd.xlane.f32.xlu1 %v605_v28  ;;  %609 = vadd.xlane.f32.xlu0 %v608_v32  ;;  %v1728_v28 = vld [vmem:[%s2836_s5 + $0xf4] ss:$8 sps:$4 sm:$0xff]  }
 0x1a8   :  { %884 = vmatpush1.bf16.msra.mxu1 %v1699_v9 }
 0x1a9   :  { %885 = vmatprep.subr.bf16.mxu1 %v1704_v53 }
 0x1ab   :  { %612 = vadd.xlane.f32.xlu1 %v611_v33 }
 0x1ac   :  { %886 = vmatpush1.bf16.msra.mxu1 %v1702_v6 }
 0x1ad   :  { %887 = vmatprep.subr.bf16.mxu1 %v1707_v10 }
 0x1b0   :  { %888 = vmatpush1.bf16.msra.mxu1 %v1705_v55 }
 0x1b1   :  { %889 = vmatprep.subr.bf16.mxu1 %v1710_v14  ;;  %v2396_v14 = vld [vmem:[%s2834_s3 + $0x30] sm:$0xff] }
 0x1b4   :  { %890 = vmatpush1.bf16.msra.mxu1 %v1708_v7 }
 0x1b5   :  { %891 = vmatprep.subr.bf16.mxu1 %v1713_v29 }
 0x1b8   :  { %892 = vmatpush1.bf16.msra.mxu1 %v1711_v12  ;;  %v2401_v12 = vld [vmem:[%s2834_s3 + $0x38] sm:$0xff] }
 0x1b9   :  { %893 = vmatprep.subr.bf16.mxu1 %v1716_v13  ;;  %vm1059_vm5 = vcmp.gt.f32.partialorder %v2401_v12, 0.5 }
 0x1bc   :  { %894 = vmatpush1.bf16.msra.mxu1 %v1714_v16 }
 0x1bd   :  { %895 = vmatprep.subr.bf16.mxu1 %v1719_v19 }
 0x1c0   :  { %896 = vmatpush1.bf16.msra.mxu1 %v1717_v17 }
 0x1c1   :  { %897 = vmatprep.subr.bf16.mxu1 %v1722_v20 }
 0x1c4   :  { %898 = vmatpush1.bf16.msra.mxu1 %v1720_v22 }
 0x1c5   :  { %899 = vmatprep.subr.bf16.mxu1 %v1725_v25 }
 0x1c8   :  { %900 = vmatpush1.bf16.msra.mxu1 %v1723_v23 }
 0x1c9   :  { %901 = vmatprep.subr.bf16.mxu1 %v1728_v28 }
 0x1cc   :  { %902 = vmatpush1.bf16.msra.mxu1 %v1726_v30  ;;  %v2420_v30 = vld [vmem:[%s2834_s3 + $0x40] sm:$0xff] }
 0x1cf   :  { %904 = vmatmul.mubr.bf16.vlgmr.msra.gmra.mrb[4].mxu1 %v2182_v41 }
 0x1d0   :  { %913 = vmatprep.mubr.bf16.mxu1 %v2187_v44 }
 0x1d7   :  { %914 = vmatmul.mubr.bf16.gmra.mrb[8].mxu1 %v2013_v5 }
 0x1d8   :  { %923 = vmatprep.mubr.bf16.mxu1 %v2021_v8 }
 0x1df   :  { %924 = vmatmul.mubr.bf16.gmra.mrb[12].mxu1 %v2029_v11 }
 0x1e0   :  { %933 = vmatprep.mubr.bf16.mxu1 %v2037_v15 }
 0x1e7   :  { %934 = vmatmul.mubr.bf16.gmra.mrb[16].mxu1 %v2045_v18 }
 0x1e8   :  { %943 = vmatprep.mubr.bf16.mxu1 %v2056_v21 }
 0x1ef   :  { %944 = vmatmul.mubr.bf16.gmra.mrb[20].mxu1 %v2064_v24 }
 0x214   :  { %v292_v35 = vpop.xlane.xlu0 %291 }
 0x215   :  { %1733 = vrcp.f32 %v292_v35 }
 0x218   :  { %v295_v34 = vpop.xlane.xlu1 %294 }
 0x219   :  { %1735 = vrcp.f32 %v295_v34 }
 0x21f   :  { %v1734_v36 = vpop.eup %1733 }
 0x220   :  { %v298_v39 = vmul.f32 %v1734_v36, %v1992_v54  ;;  %v2861_v54 = vld [vmem:[#allocation9_spill] sm:$0xff] }
 0x221   :  { %953 = vmatprep.mubr.bf16.mxu1 %v2861_v54 }
 0x223   :  { %v1736_v38 = vpop.eup %1735 }
 0x224   :  { %v299_v40 = vmul.f32 %v1736_v38, %v1997_v57  ;;  %v2862_v57 = vld [vmem:[#allocation10_spill] sm:$0xff]  ;;  %v2332_v38 = vld [vmem:[%s2834_s3] sm:$0xff] }
 0x225   :  { %954 = vmatmul.mubr.bf16.gmra.mrb[24].mxu1 %v2862_v57  ;;  %vm1052_vm7 = vcmp.gt.f32.partialorder %v2332_v38, 0.5 }
 0x226   :  { %v300_v43 = vpack.c.bf16 %v299_v40, %v298_v39  ;;  %963 = vmatprep.mubr.bf16.mxu1 %v2863_v47  ;;  %v2338_v40 = vld [vmem:[%s2834_s3 + $0x8] sm:$0xff] }
 0x227   :  { %vm1053_vm9 = vcmp.gt.f32.partialorder %v2338_v40, 0.5 }
 0x228   :  { %1564 = vmatmul.mubr.msk.bf16.vlgmr.msra.gmra.mrb[4].mxu0 %vm275_vm4, %v300_v43  ;;  %vm1058_vm4 = vcmp.gt.f32.partialorder %v2396_v14, 0.5 }
 0x229   :  { %1617 = vmatpush1.bf16.xpose.msra.mxu0 %v2182_v41  ;;  %689 = vmatprep.mubr.f32.mxu0 %v622_v42 }
 0x22a   :  { %1619 = vmatprep.subr.bf16.mxu0 %v2187_v44 }
 0x22d   :  { %964 = vmatmul.mubr.bf16.gmra.mrb[28].mxu1 %v2864_v48 }
 0x22e   :  { %973 = vmatprep.mubr.bf16.mxu1 %v2865_v49 }
 0x231   :  { %1621 = vmatpush1.bf16.xpose.msra.mxu0 %v2013_v5  ;;  %v568_v5 = vpop.xlane.xlu0 %567 }
 0x232   :  { %1623 = vmatprep.subr.bf16.mxu0 %v2021_v8  ;;  %v571_v8 = vpop.xlane.xlu1 %570 }
 0x235   :  { %974 = vmatmul.mubr.bf16.gmra.mrb[32].mxu1 %v2866_v50 }
 0x239   :  { %1625 = vmatpush1.bf16.xpose.msra.mxu0 %v2029_v11  ;;  %v574_v11 = vpop.xlane.xlu0 %573 }
 0x23a   :  { %1627 = vmatprep.subr.bf16.mxu0 %v2037_v15  ;;  %v577_v15 = vpop.xlane.xlu1 %576 }
 0x241   :  { %1629 = vmatpush1.bf16.xpose.msra.mxu0 %v2045_v18  ;;  %v580_v18 = vpop.xlane.xlu0 %579 }
 0x242   :  { %1631 = vmatprep.subr.bf16.mxu0 %v2056_v21  ;;  %v583_v21 = vpop.xlane.xlu1 %582 }
 0x245   :  { %v586_v35 = vpop.xlane.xlu0 %585 }
 0x249   :  { %1633 = vmatpush1.bf16.xpose.msra.mxu0 %v2064_v24  ;;  %v589_v24 = vpop.xlane.xlu1 %588  ;;  %v592_v42 = vpop.xlane.xlu0 %591 }
 0x24a   :  { %1635 = vmatprep.subr.bf16.mxu0 %v2861_v54 }
 0x24d   :  { %v595_v43 = vpop.xlane.xlu1 %594  ;;  %v598_v1 = vpop.xlane.xlu0 %597 }
 0x251   :  { %1637 = vmatpush1.bf16.xpose.msra.mxu0 %v2862_v57  ;;  %v2347_v57 = vld [vmem:[%s2834_s3 + $0x10] sm:$0xff]  ;;  %v601_v3 = vpop.xlane.xlu1 %600  ;;  %v604_v22 = vpop.xlane.xlu0 %603 }
 0x252   :  { %1639 = vmatprep.subr.bf16.mxu0 %v2863_v47  ;;  %v2352_v47 = vld [vmem:[%s2834_s3 + $0x18] sm:$0xff]  ;;  %vm1054_vm12 = vcmp.gt.f32.partialorder %v2347_v57, 0.5 }
 0x253   :  { %vm1055_vm13 = vcmp.gt.f32.partialorder %v2352_v47, 0.5 }
 0x255   :  { %v607_v20 = vpop.xlane.xlu1 %606 }
 0x259   :  { %1641 = vmatpush1.bf16.xpose.msra.mxu0 %v2864_v48 }
 0x25a   :  { %1643 = vmatprep.subr.bf16.mxu0 %v2865_v49 }
 0x261   :  { %1645 = vmatpush1.bf16.xpose.msra.mxu0 %v2866_v50 }
 0x268   :  { %690 = vmatmul.mubr.f32.vlgmr.msra.gmra.mrb[2].mxu0 %v618_v27 }
 0x269   :  { %1311 = vmatprep.mubr.bf16.mxu0 %v2868_v56 }
 0x2fb   :  { %v2309_v26 = vpop.f32.mrb[4].mxu0 }
 0x2fc   :  { %v2311_v31 = vpop.f32.mrb[5].mxu0 }
 0x2fd   :  { %v2313_v32 = vpop.f32.mrb[6].mxu0 }
 0x2fe   :  { %v2315_v33 = vpop.f32.mrb[7].mxu0 }
 0x33b   :  { %v691_v34 = vpop.f32.mrb[2].mxu0 }
 0x33c   :  { %v2327_v36 = vrot.slane %v691_v34, %v2867_v51  ;;  %v693_v37 = vpop.f32.mrb[3].mxu0 }
 0x33e   :  { %v988_v39 = vadd.f32 %v2327_v36, %v568_v5  ;;  %v989_v41 = vadd.f32 %v2327_v36, %v571_v8  ;;  %v990_v44 = vadd.f32 %v2327_v36, %v574_v11  ;;  %v991_v54 = vadd.f32 %v2327_v36, %v577_v15  ;;  %v2425_v5 = vld [vmem:[%s2834_s3 + $0x48] sm:$0xff] }
 0x33f   :  { %v992_v48 = vadd.f32 %v2327_v36, %v580_v18  ;;  %v993_v27 = vadd.f32 %v2327_v36, %v583_v21  ;;  %v994_v6 = vadd.f32 %v2327_v36, %v586_v35  ;;  %v995_v53 = vadd.f32 %v2327_v36, %v589_v24  ;;  %v2436_v35 = vld [vmem:[%s2834_s3 + $0x50] sm:$0xff]  ;;  %v2441_v24 = vld [vmem:[%s2834_s3 + $0x58] sm:$0xff] }
 0x340   :  { %vm1004_vm6 = vcmp.gt.f32.partialorder %v988_v39, 0.0  ;;  %vm1005_vm8 = vcmp.gt.f32.partialorder %v989_v41, 0.0  ;;  %v1020_v49 = vmul.f32 0.2, %v988_v39  ;;  %v1021_v50 = vmul.f32 0.2, %v989_v41 }
 0x341   :  { %vm1006_vm10 = vcmp.gt.f32.partialorder %v990_v44, 0.0  ;;  %v1022_v58 = vmul.f32 0.2, %v990_v44  ;;  %vm1007_vm11 = vcmp.gt.f32.partialorder %v991_v54, 0.0  ;;  %v1023_v59 = vmul.f32 0.2, %v991_v54 }
 0x342   :  { %v1036_v60 = vsel %vm1004_vm6, %v988_v39, %v1020_v49  ;;  %v1037_v61 = vsel %vm1005_vm8, %v989_v41, %v1021_v50  ;;  %v1024_v0 = vmul.f32 0.2, %v992_v48  ;;  %vm1008_vm14 = vcmp.gt.f32.partialorder %v992_v48, 0.0 }
 0x343   :  { %v2371_v2 = vsel %vm1052_vm7, %v1036_v60, -1e+30  ;;  %v2375_v45 = vsel %vm1053_vm9, %v1037_v61, -1e+30  ;;  %v1038_v4 = vsel %vm1006_vm10, %v990_v44, %v1022_v58  ;;  %v1039_v52 = vsel %vm1007_vm11, %v991_v54, %v1023_v59 }
 0x344   :  { %1084 = vmax.xlane.f32.xlu0 %v2371_v2  ;;  %1086 = vmax.xlane.f32.xlu1 %v2375_v45  ;;  %v1025_v9 = vmul.f32 0.2, %v993_v27  ;;  %vm1009_vm15 = vcmp.gt.f32.partialorder %v993_v27, 0.0  ;;  %v2387_v55 = vsel %vm1054_vm12, %v1038_v4, -1e+30  ;;  %v1040_v7 = vsel %vm1008_vm14, %v992_v48, %v1024_v0  ;;  %v2472_v0 = vld [vmem:[%s2834_s3 + $0x60] sm:$0xff] }
 0x345   :  { %v2391_v10 = vsel %vm1055_vm13, %v1039_v52, -1e+30  ;;  %v996_v29 = vadd.f32 %v2327_v36, %v592_v42  ;;  %v1026_v13 = vmul.f32 0.2, %v994_v6  ;;  %v1027_v17 = vmul.f32 0.2, %v995_v53  ;;  %v610_v42 = vpop.xlane.xlu0 %609 }
 0x346   :  { %v1041_v16 = vsel %vm1009_vm15, %v993_v27, %v1025_v9  ;;  %v997_v19 = vadd.f32 %v2327_v36, %v595_v43  ;;  %vm1010_vm2 = vcmp.gt.f32.partialorder %v994_v6, 0.0  ;;  %vm1011_vm3 = vcmp.gt.f32.partialorder %v995_v53, 0.0  ;;  %v613_v43 = vpop.xlane.xlu1 %612 }
 0x347   :  { %v2409_v23 = vsel %vm1056_vm0, %v1040_v7, -1e+30  ;;  %v2415_v25 = vsel %vm1057_vm1, %v1041_v16, -1e+30  ;;  %v1028_v28 = vmul.f32 0.2, %v996_v29  ;;  %v998_v8 = vadd.f32 %v2327_v36, %v598_v1 }
 0x348   :  { %1088 = vmax.xlane.f32.xlu0 %v2387_v55  ;;  %1090 = vmax.xlane.f32.xlu1 %v2391_v10  ;;  %v999_v11 = vadd.f32 %v2327_v36, %v601_v3  ;;  %v1042_v15 = vsel %vm1010_vm2, %v994_v6, %v1026_v13  ;;  %v1043_v18 = vsel %vm1011_vm3, %v995_v53, %v1027_v17  ;;  %vm1012_vm6 = vcmp.gt.f32.partialorder %v996_v29, 0.0  ;;  %v2477_v1 = vld [vmem:[%s2834_s3 + $0x68] sm:$0xff]  ;;  %v2499_v16 = vld [vmem:[%s2834_s3 + $0x78] sm:$0xff] }
 0x349   :  { %v1029_v21 = vmul.f32 0.2, %v997_v19  ;;  %vm1013_vm8 = vcmp.gt.f32.partialorder %v997_v19, 0.0  ;;  %vm1060_vm10 = vcmp.gt.f32.partialorder %v2420_v30, 0.5  ;;  %vm1061_vm11 = vcmp.gt.f32.partialorder %v2425_v5, 0.5 }
 0x34a   :  { %v2445_v34 = vsel %vm1058_vm4, %v1042_v15, -1e+30  ;;  %v2449_v37 = vsel %vm1059_vm5, %v1043_v18, -1e+30  ;;  %v1044_v39 = vsel %vm1012_vm6, %v996_v29, %v1028_v28  ;;  %v1030_v41 = vmul.f32 0.2, %v998_v8 }
 0x34b   :  { %v1045_v44 = vsel %vm1013_vm8, %v997_v19, %v1029_v21  ;;  %v1031_v54 = vmul.f32 0.2, %v999_v11  ;;  %v1000_v48 = vadd.f32 %v2327_v36, %v604_v22  ;;  %v1001_v49 = vadd.f32 %v2327_v36, %v607_v20  ;;  %v2494_v29 = vld [vmem:[%s2834_s3 + $0x70] sm:$0xff] }
 0x34c   :  { %1092 = vmax.xlane.f32.xlu0 %v2409_v23  ;;  %1094 = vmax.xlane.f32.xlu1 %v2415_v25  ;;  %vm1014_vm14 = vcmp.gt.f32.partialorder %v998_v8, 0.0  ;;  %vm1015_vm15 = vcmp.gt.f32.partialorder %v999_v11, 0.0  ;;  %vm2852_vm2 = vcmp.gt.f32.partialorder %v2436_v35, 0.5  ;;  %vm2853_vm3 = vcmp.gt.f32.partialorder %v2441_v24, 0.5 }
 0x34d   :  { %v1002_v50 = vadd.f32 %v2327_v36, %v610_v42  ;;  %v1003_v27 = vadd.f32 %v2327_v36, %v613_v43  ;;  %v2461_v58 = vsel %vm1060_vm10, %v1044_v39, -1e+30  ;;  %v2465_v59 = vsel %vm1061_vm11, %v1045_v44, -1e+30 }
 0x34e   :  { %v1046_v60 = vsel %vm1014_vm14, %v998_v8, %v1030_v41  ;;  %v1047_v61 = vsel %vm1015_vm15, %v999_v11, %v1031_v54  ;;  %v1032_v36 = vmul.f32 0.2, %v1000_v48  ;;  %v1033_v3 = vmul.f32 0.2, %v1001_v49  ;;  %v905_v8 = vpop.f32.mrb[4].mxu1 }
 0x34f   :  { %vm1016_vm6 = vcmp.gt.f32.partialorder %v1000_v48, 0.0  ;;  %vm1017_vm8 = vcmp.gt.f32.partialorder %v1001_v49, 0.0  ;;  %v2481_v4 = vsel %vm2852_vm2, %v1046_v60, -1e+30  ;;  %v2485_v52 = vsel %vm2853_vm3, %v1047_v61, -1e+30 }
 0x350   :  { %1096 = vmax.xlane.f32.xlu0 %v2445_v34  ;;  %1098 = vmax.xlane.f32.xlu1 %v2449_v37  ;;  %vm1064_vm14 = vcmp.gt.f32.partialorder %v2472_v0, 0.5  ;;  %vm1065_vm15 = vcmp.gt.f32.partialorder %v2477_v1, 0.5  ;;  %v1034_v9 = vmul.f32 0.2, %v1002_v50  ;;  %v1035_v6 = vmul.f32 0.2, %v1003_v27 }
 0x351   :  { %v1048_v53 = vsel %vm1016_vm6, %v1000_v48, %v1032_v36  ;;  %v1049_v7 = vsel %vm1017_vm8, %v1001_v49, %v1033_v3  ;;  %vm1018_vm2 = vcmp.gt.f32.partialorder %v1002_v50, 0.0  ;;  %vm1019_vm3 = vcmp.gt.f32.partialorder %v1003_v27, 0.0  ;;  %v907_v11 = vpop.f32.mrb[5].mxu1  ;;  %v365_v1 = vld [vmem:[%s2838_s7 + $0x8] sm:$0xff] }
 0x352   :  { %v2503_v13 = vsel %vm1064_vm14, %v1048_v53, -1e+30  ;;  %v2507_v17 = vsel %vm1065_vm15, %v1049_v7, -1e+30  ;;  %v1050_v19 = vsel %vm1018_vm2, %v1002_v50, %v1034_v9  ;;  %vm1066_vm6 = vcmp.gt.f32.partialorder %v2494_v29, 0.5  ;;  %v909_v15 = vpop.f32.mrb[6].mxu1 }
 0x353   :  { %v1051_v22 = vsel %vm1019_vm3, %v1003_v27, %v1035_v6  ;;  %vm1067_vm8 = vcmp.gt.f32.partialorder %v2499_v16, 0.5  ;;  %v2515_v20 = vsel %vm1066_vm6, %v1050_v19, -1e+30  ;;  %v1252_v18 = vpack.c.bf16 %v909_v15, %v905_v8  ;;  %v911_v21 = vpop.f32.mrb[7].mxu1 }
 0x354   :  { %1100 = vmax.xlane.f32.xlu0 %v2461_v58  ;;  %1102 = vmax.xlane.f32.xlu1 %v2465_v59  ;;  %v2519_v28 = vsel %vm1067_vm8, %v1051_v22, -1e+30  ;;  %v1253_v39 = vpack.c.bf16 %v911_v21, %v907_v11  ;;  %v915_v41 = vpop.f32.mrb[8].mxu1  ;;  %v1853_v16 = vmov 1  }
 0x355   :  { %v917_v42 = vpop.f32.mrb[9].mxu1 }
 0x356   :  { %1279 = vmatprep.subr.bf16.mxu0 %v1253_v39  ;;  %v919_v43 = vpop.f32.mrb[10].mxu1 }
 0x357   :  { %1280 = vmatpush1.bf16.msra.mxu0 %v1252_v18  ;;  %v1254_v44 = vpack.c.bf16 %v919_v43, %v915_v41  ;;  %v921_v54 = vpop.f32.mrb[11].mxu1 }
 0x358   :  { %1104 = vmax.xlane.f32.xlu0 %v2481_v4  ;;  %1106 = vmax.xlane.f32.xlu1 %v2485_v52  ;;  %v1255_v48 = vpack.c.bf16 %v921_v54, %v917_v42  ;;  %v925_v49 = vpop.f32.mrb[12].mxu1 }
 0x359   :  { %v927_v50 = vpop.f32.mrb[13].mxu1 }
 0x35a   :  { %1281 = vmatprep.subr.bf16.mxu0 %v1255_v48  ;;  %v929_v27 = vpop.f32.mrb[14].mxu1 }
 0x35b   :  { %1282 = vmatpush1.bf16.msra.mxu0 %v1254_v44  ;;  %v1256_v60 = vpack.c.bf16 %v929_v27, %v925_v49  ;;  %v931_v61 = vpop.f32.mrb[15].mxu1 }
 0x35c   :  { %1108 = vmax.xlane.f32.xlu0 %v2503_v13  ;;  %1110 = vmax.xlane.f32.xlu1 %v2507_v17  ;;  %v1257_v36 = vpack.c.bf16 %v931_v61, %v927_v50  ;;  %v935_v7 = vpop.f32.mrb[16].mxu1 }
 0x35d   :  { %v937_v19 = vpop.f32.mrb[17].mxu1 }
 0x35e   :  { %1283 = vmatprep.subr.bf16.mxu0 %v1257_v36  ;;  %v939_v11 = vpop.f32.mrb[18].mxu1 }
 0x35f   :  { %1284 = vmatpush1.bf16.msra.mxu0 %v1256_v60  ;;  %v1258_v21 = vpack.c.bf16 %v939_v11, %v935_v7  ;;  %v941_v42 = vpop.f32.mrb[19].mxu1 }
 0x360   :  { %1112 = vmax.xlane.f32.xlu0 %v2515_v20  ;;  %1114 = vmax.xlane.f32.xlu1 %v2519_v28  ;;  %v1259_v43 = vpack.c.bf16 %v941_v42, %v937_v19  ;;  %v945_v50 = vpop.f32.mrb[20].mxu1 }
 0x361   :  { %v947_v27 = vpop.f32.mrb[21].mxu1 }
 0x362   :  { %1285 = vmatprep.subr.bf16.mxu0 %v1259_v43 }
 0x363   :  { %1286 = vmatpush1.bf16.msra.mxu0 %v1258_v21 }
 0x3d1   :  { %v1085_v3 = vpop.xlane.xlu0 %1084  ;;  %v1087_v9 = vpop.xlane.xlu1 %1086 }
 0x3d2   :  { %v1116_v6 = vsub.f32 %v2371_v2, %v1085_v3  ;;  %v1117_v53 = vsub.f32 %v2375_v45, %v1087_v9 }
 0x3d4   :  { %v1132_v22 = vmul.f32 1.442695, %v1116_v6  ;;  %v1134_v8 = vmul.f32 1.442695, %v1117_v53 }
 0x3d5   :  { %v1089_v15 = vpop.xlane.xlu0 %1088  ;;  %v1091_v18 = vpop.xlane.xlu1 %1090 }
 0x3d6   :  { %1737 = vpow2.f32 %v1132_v22  ;;  %v1118_v39 = vsub.f32 %v2387_v55, %v1089_v15  ;;  %v1119_v41 = vsub.f32 %v2391_v10, %v1091_v18  ;;  %v949_v10 = vpop.f32.mrb[22].mxu1 }
 0x3d7   :  { %1739 = vpow2.f32 %v1134_v8  ;;  %v1260_v3 = vpack.c.bf16 %v949_v10, %v945_v50  ;;  %v951_v53 = vpop.f32.mrb[23].mxu1 }
 0x3d8   :  { %v1136_v44 = vmul.f32 1.442695, %v1118_v39  ;;  %v1138_v2 = vmul.f32 1.442695, %v1119_v41  ;;  %v955_v21 = vpop.f32.mrb[24].mxu1 }
 0x3d9   :  { %v1093_v54 = vpop.xlane.xlu0 %1092  ;;  %v1095_v45 = vpop.xlane.xlu1 %1094 }
 0x3da   :  { %1741 = vpow2.f32 %v1136_v44  ;;  %v1120_v48 = vsub.f32 %v2409_v23, %v1093_v54  ;;  %v1121_v49 = vsub.f32 %v2415_v25, %v1095_v45  ;;  %v1261_v23 = vpack.c.bf16 %v951_v53, %v947_v27  ;;  %v957_v38 = vpop.f32.mrb[25].mxu1 }
 0x3db   :  { %1743 = vpow2.f32 %v1138_v2  ;;  %v959_v43 = vpop.f32.mrb[26].mxu1 }
 0x3dc   :  { %v1140_v55 = vmul.f32 1.442695, %v1120_v48  ;;  %v1142_v60 = vmul.f32 1.442695, %v1121_v49  ;;  %1287 = vmatprep.subr.bf16.mxu0 %v1261_v23  ;;  %v1262_v40 = vpack.c.bf16 %v959_v43, %v955_v21  ;;  %v961_v49 = vpop.f32.mrb[27].mxu1 }
 0x3dd   :  { %v1097_v61 = vpop.xlane.xlu0 %1096  ;;  %v1099_v36 = vpop.xlane.xlu1 %1098  ;;  %1288 = vmatpush1.bf16.msra.mxu0 %v1260_v3  ;;  %v1263_v50 = vpack.c.bf16 %v961_v49, %v957_v38 }
 0x3de   :  { %1745 = vpow2.f32 %v1140_v55  ;;  %v1122_v9 = vsub.f32 %v2445_v34, %v1097_v61  ;;  %v1123_v6 = vsub.f32 %v2449_v37, %v1099_v36  ;;  %v965_v3 = vpop.f32.mrb[28].mxu1 }
 0x3df   :  { %1747 = vpow2.f32 %v1142_v60  ;;  %1289 = vmatprep.subr.bf16.mxu0 %v1263_v50  ;;  %v967_v62 = vpop.f32.mrb[29].mxu1 }
 0x3e0   :  { %v1738_v7 = vpop.eup %1737  ;;  %v1144_v25 = vmul.f32 1.442695, %v1122_v9  ;;  %v1146_v19 = vmul.f32 1.442695, %v1123_v6  ;;  %v969_v23 = vpop.f32.mrb[30].mxu1 }
 0x3e1   :  { %v1740_v22 = vpop.eup %1739  ;;  %v1101_v8 = vpop.xlane.xlu0 %1100  ;;  %v2533_v15 = vsel %vm1052_vm7, %v1738_v7, 0.0  ;;  %1290 = vmatpush1.bf16.msra.mxu0 %v1262_v40  ;;  %v1264_v63 = vpack.c.bf16 %v969_v23, %v965_v3  ;;  %vm2869_vm7 = vcmp.gt.f32.partialorder %v2436_v35, 0.5 }
 0x3e2   :  { %v1103_v11 = vpop.xlane.xlu1 %1102  ;;  %1749 = vpow2.f32 %v1144_v25  ;;  %v1124_v18 = vsub.f32 %v2461_v58, %v1101_v8  ;;  %1180 = vadd.xlane.f32.xlu0 %v2533_v15  ;;  %v2540_v37 = vsel %vm1053_vm9, %v1740_v22, 0.0  ;;  %vm2870_vm9 = vcmp.gt.f32.partialorder %v2441_v24, 0.5 }
 0x3e3   :  { %v1125_v34 = vsub.f32 %v2465_v59, %v1103_v11  ;;  %1751 = vpow2.f32 %v1146_v19  ;;  %1182 = vadd.xlane.f32.xlu1 %v2540_v37  ;;  %v971_v11 = vpop.f32.mrb[31].mxu1 }
 0x3e4   :  { %v1742_v39 = vpop.eup %1741  ;;  %v1148_v41 = vmul.f32 1.442695, %v1124_v18  ;;  %v1265_v18 = vpack.c.bf16 %v971_v11, %v967_v62 }
 0x3e5   :  { %v1150_v42 = vmul.f32 1.442695, %v1125_v34  ;;  %v1744_v44 = vpop.eup %1743  ;;  %v1105_v58 = vpop.xlane.xlu0 %1104  ;;  %v2545_v59 = vsel %vm1054_vm12, %v1742_v39, 0.0  ;;  %vm367_vm12 = vcmp.gt.f32.partialorder %v365_v1, 0.5 }
 0x3e6   :  { %v1107_v2 = vpop.xlane.xlu1 %1106  ;;  %1753 = vpow2.f32 %v1148_v41  ;;  %v1126_v54 = vsub.f32 %v2481_v4, %v1105_v58  ;;  %1184 = vadd.xlane.f32.xlu0 %v2545_v59  ;;  %v2552_v48 = vsel %vm1055_vm13, %v1744_v44, 0.0  ;;  %1291 = vmatprep.subr.bf16.mxu0 %v1265_v18  ;;  %v369_v29 = vsel %vm367_vm12, 1, %v2868_v56 }
 0x3e7   :  { %v1127_v45 = vsub.f32 %v2485_v52, %v1107_v2  ;;  %1755 = vpow2.f32 %v1150_v42  ;;  %1186 = vadd.xlane.f32.xlu1 %v2552_v48  ;;  %1292 = vmatpush1.bf16.msra.mxu0 %v1264_v63 }
 0x3e8   :  { %v1746_v57 = vpop.eup %1745  ;;  %v1152_v27 = vmul.f32 1.442695, %v1126_v54 }
 0x3e9   :  { %v1154_v55 = vmul.f32 1.442695, %v1127_v45  ;;  %v1748_v60 = vpop.eup %1747  ;;  %v1109_v10 = vpop.xlane.xlu0 %1108  ;;  %v2557_v4 = vsel %vm1056_vm0, %v1746_v57, 0.0  ;;  %v364_v57 = vld [vmem:[%s2838_s7] sm:$0xff] }
 0x3ea   :  { %v1111_v61 = vpop.xlane.xlu1 %1110  ;;  %1757 = vpow2.f32 %v1152_v27  ;;  %v1128_v47 = vsub.f32 %v2503_v13, %v1109_v10  ;;  %1188 = vadd.xlane.f32.xlu0 %v2557_v4  ;;  %v2564_v36 = vsel %vm1057_vm1, %v1748_v60, 0.0  ;;  %vm366_vm13 = vcmp.gt.f32.partialorder %v364_v57, 0.5 }
 0x3eb   :  { %v1129_v52 = vsub.f32 %v2507_v17, %v1111_v61  ;;  %1759 = vpow2.f32 %v1154_v55  ;;  %1190 = vadd.xlane.f32.xlu1 %v2564_v36  ;;  %v368_v27 = vsel %vm366_vm13, 1, %v2868_v56 }
 0x3ec   :  { %v1750_v9 = vpop.eup %1749  ;;  %v1156_v6 = vmul.f32 1.442695, %v1128_v47 }
 0x3ed   :  { %v1158_v53 = vmul.f32 1.442695, %v1129_v52  ;;  %v1752_v7 = vpop.eup %1751  ;;  %v1113_v13 = vpop.xlane.xlu0 %1112  ;;  %v2569_v17 = vsel %vm1058_vm4, %v1750_v9, 0.0 }
 0x3ee   :  { %v1115_v25 = vpop.xlane.xlu1 %1114  ;;  %1761 = vpow2.f32 %v1156_v6  ;;  %v1130_v19 = vsub.f32 %v2515_v20, %v1113_v13  ;;  %1192 = vadd.xlane.f32.xlu0 %v2569_v17  ;;  %v2576_v8 = vsel %vm1059_vm5, %v1752_v7, 0.0 }
 0x3ef   :  { %v1131_v22 = vsub.f32 %v2519_v28, %v1115_v25  ;;  %1763 = vpow2.f32 %v1158_v53  ;;  %1194 = vadd.xlane.f32.xlu1 %v2576_v8  ;;  %v975_v28 = vpop.f32.mrb[32].mxu1 }
 0x3f0   :  { %v1754_v14 = vpop.eup %1753  ;;  %v1160_v34 = vmul.f32 1.442695, %v1130_v19  ;;  %v977_v39 = vpop.f32.mrb[33].mxu1 }
 0x3f1   :  { %v1162_v21 = vmul.f32 1.442695, %v1131_v22  ;;  %v1756_v38 = vpop.eup %1755  ;;  %v2581_v20 = vsel %vm1060_vm10, %v1754_v14, 0.0  ;;  %v979_v41 = vpop.f32.mrb[34].mxu1  ;;  %vm422_vm10 = vcmask 1040384  }
 0x3f2   :  { %1765 = vpow2.f32 %v1160_v34  ;;  %1196 = vadd.xlane.f32.xlu0 %v2581_v20  ;;  %v2586_v12 = vsel %vm1061_vm11, %v1756_v38, 0.0  ;;  %v1266_v43 = vpack.c.bf16 %v979_v41, %v975_v28  ;;  %v981_v58 = vpop.f32.mrb[35].mxu1 }
 0x3f3   :  { %1767 = vpow2.f32 %v1162_v21  ;;  %1198 = vadd.xlane.f32.xlu1 %v2586_v12  ;;  %v1267_v2 = vpack.c.bf16 %v981_v58, %v977_v39  ;;  %v1547_v21 = vld [vmem:[%s2837_s6 + $0x2] ss:$8 sm:$0x3] }
 0x3f4   :  { %v1758_v42 = vpop.eup %1757  ;;  %v307_v39 = vrot.slane %v1547_v21, %v2867_v51  ;;  %v311_v41 = vrot.slane %v1547_v21, %v2139_v46 }
 0x3f5   :  { %v1760_v30 = vpop.eup %1759  ;;  %v2591_v44 = vsel %vm2869_vm7, %v1758_v42, 0.0  ;;  %1293 = vmatprep.subr.bf16.mxu0 %v1267_v2 }
 0x3f6   :  { %1200 = vadd.xlane.f32.xlu0 %v2591_v44  ;;  %v2596_v5 = vsel %vm2870_vm9, %v1760_v30, 0.0  ;;  %1294 = vmatpush1.bf16.msra.mxu0 %v1266_v43  ;;  %v356_v30 = vadd.f32 %v2313_v32, %v307_v39 }
 0x3f7   :  { %1202 = vadd.xlane.f32.xlu1 %v2596_v5 }
 0x3f8   :  { %v1762_v40 = vpop.eup %1761 }
 0x3f9   :  { %v1764_v54 = vpop.eup %1763  ;;  %v2601_v45 = vsel %vm1064_vm14, %v1762_v40, 0.0  ;;  %v352_v40 = vadd.f32 %v2309_v26, %v307_v39 }
 0x3fa   :  { %1204 = vadd.xlane.f32.xlu0 %v2601_v45  ;;  %v2606_v35 = vsel %vm1065_vm15, %v1764_v54, 0.0  ;;  %v354_v54 = vadd.f32 %v2311_v31, %v311_v41 }
 0x3fb   :  { %1206 = vadd.xlane.f32.xlu1 %v2606_v35  ;;  %v360_v57 = vmax.f32 %v352_v40, 0.0 }
 0x3fc   :  { %v1766_v24 = vpop.eup %1765 }
 0x3fd   :  { %v1768_v49 = vpop.eup %1767  ;;  %v2611_v50 = vsel %vm1066_vm6, %v1766_v24, 0.0 }
 0x3fe   :  { %1208 = vadd.xlane.f32.xlu0 %v2611_v50  ;;  %v2616_v0 = vsel %vm1067_vm8, %v1768_v49, 0.0  ;;  %v362_v49 = vmax.f32 %v356_v30, 0.0 }
 0x3ff   :  { %1210 = vadd.xlane.f32.xlu1 %v2616_v0 }
 0x410   :  { %374 = vperm.xlu1 %1654, %v369_v29  }
 0x414   :  { %1655 = vset.pattern.permute.xlu1 %v1853_v16  ;;  %371 = vperm.xlu0 %1653, %v368_v27  }
 0x415   :  { %397 = vperm.xlu1 %1655, %v368_v27  }
 0x418   :  { %1656 = vset.pattern.permute.xlu0 %v1853_v16 }
 0x419   :  { %400 = vperm.xlu1 %1655, %v369_v29   ;;  %v361_v29 = vmax.f32 %v354_v54, 0.0 }
 0x46f   :  { %v1181_v55 = vpop.xlane.xlu0 %1180 }
 0x470   :  { %1769 = vrcp.f32 %v1181_v55  ;;  %v1183_v60 = vpop.xlane.xlu1 %1182 }
 0x471   :  { %1771 = vrcp.f32 %v1183_v60 }
 0x473   :  { %v1185_v10 = vpop.xlane.xlu0 %1184 }
 0x474   :  { %1773 = vrcp.f32 %v1185_v10  ;;  %v1187_v61 = vpop.xlane.xlu1 %1186 }
 0x475   :  { %1775 = vrcp.f32 %v1187_v61 }
 0x477   :  { %v1189_v47 = vpop.xlane.xlu0 %1188 }
 0x478   :  { %v1191_v52 = vpop.xlane.xlu1 %1190  ;;  %1777 = vrcp.f32 %v1189_v47 }
 0x479   :  { %1779 = vrcp.f32 %v1191_v52 }
 0x47a   :  { %v1770_v3 = vpop.eup %1769 }
 0x47b   :  { %v1772_v62 = vpop.eup %1771  ;;  %v1193_v9 = vpop.xlane.xlu0 %1192  ;;  %v1228_v6 = vmul.f32 %v1770_v3, %v2533_v15 }
 0x47c   :  { %v1195_v53 = vpop.xlane.xlu1 %1194  ;;  %v1229_v23 = vmul.f32 %v1772_v62, %v2540_v37  ;;  %1781 = vrcp.f32 %v1193_v9 }
 0x47d   :  { %1783 = vrcp.f32 %v1195_v53 }
 0x47e   :  { %v1774_v7 = vpop.eup %1773  ;;  %v1244_v13 = vpack.c.bf16 %v1229_v23, %v1228_v6 }
 0x47f   :  { %v1776_v25 = vpop.eup %1775  ;;  %v1197_v63 = vpop.xlane.xlu0 %1196  ;;  %v1230_v22 = vmul.f32 %v1774_v7, %v2545_v59 }
 0x480   :  { %1312 = vmatmul.mubr.bf16.vlgmr.msra.gmra.mrb[8].mxu0 %v1244_v13  ;;  %v1199_v19 = vpop.xlane.xlu1 %1198  ;;  %v1231_v11 = vmul.f32 %v1776_v25, %v2552_v48  ;;  %1785 = vrcp.f32 %v1197_v63 }
 0x481   :  { %1321 = vmatprep.mubr.bf16.mxu0 %v2868_v56  ;;  %1787 = vrcp.f32 %v1199_v19 }
 0x482   :  { %v1778_v14 = vpop.eup %1777  ;;  %v1245_v34 = vpack.c.bf16 %v1231_v11, %v1230_v22 }
 0x483   :  { %v1201_v18 = vpop.xlane.xlu0 %1200  ;;  %v1780_v37 = vpop.eup %1779  ;;  %v1232_v59 = vmul.f32 %v1778_v14, %v2557_v4  ;;  %v358_v4 = vadd.f32 %v2315_v33, %v311_v41 }
 0x484   :  { %v1203_v15 = vpop.xlane.xlu1 %1202  ;;  %v1233_v48 = vmul.f32 %v1780_v37, %v2564_v36  ;;  %1789 = vrcp.f32 %v1201_v18 }
 0x485   :  { %v363_v27 = vmax.f32 %v358_v4, 0.0  ;;  %1791 = vrcp.f32 %v1203_v15 }
 0x486   :  { %v1782_v43 = vpop.eup %1781  ;;  %v1246_v58 = vpack.c.bf16 %v1233_v48, %v1232_v59 }
 0x487   :  { %v1205_v28 = vpop.xlane.xlu0 %1204  ;;  %v1784_v2 = vpop.eup %1783  ;;  %v1234_v1 = vmul.f32 %v1782_v43, %v2569_v17 }
 0x488   :  { %1322 = vmatmul.mubr.bf16.gmra.mrb[12].mxu0 %v1245_v34  ;;  %v1207_v38 = vpop.xlane.xlu1 %1206  ;;  %v1235_v32 = vmul.f32 %v1784_v2, %v2576_v8  ;;  %1793 = vrcp.f32 %v1205_v28 }
 0x489   :  { %1331 = vmatprep.mubr.bf16.mxu0 %v2868_v56  ;;  %1795 = vrcp.f32 %v1207_v38 }
 0x48a   :  { %v1786_v16 = vpop.eup %1785  ;;  %v1247_v17 = vpack.c.bf16 %v1235_v32, %v1234_v1 }
 0x48b   :  { %v2646_v36 = vpop.xlane.xlu0 %1208  ;;  %v1788_v61 = vpop.eup %1787  ;;  %v1236_v9 = vmul.f32 %v1786_v16, %v2581_v20 }
 0x48c   :  { %v2640_v42 = vpop.xlane.xlu1 %1210  ;;  %v1237_v23 = vmul.f32 %v1788_v61, %v2586_v12  ;;  %1797 = vrcp.f32 %v2646_v36 }
 0x48d   :  { %1799 = vrcp.f32 %v2640_v42 }
 0x48e   :  { %v1790_v20 = vpop.eup %1789  ;;  %v1248_v34 = vpack.c.bf16 %v1237_v23, %v1236_v9 }
 0x48f   :  { %v1792_v37 = vpop.eup %1791  ;;  %v1238_v43 = vmul.f32 %v1790_v20, %v2591_v44 }
 0x490   :  { %1332 = vmatmul.mubr.bf16.gmra.mrb[16].mxu0 %v1246_v58  ;;  %v375_v24 = vpop.permute.xlu1 %374  ;;  %v1239_v28 = vmul.f32 %v1792_v37, %v2596_v5 }
 0x491   :  { %vm377_vm0 = vcmp.eq.s32.totalorder %v375_v24, 1  ;;  %1341 = vmatprep.mubr.bf16.mxu0 %v2868_v56 }
 0x492   :  { %v380_v31 = vsel %vm377_vm0, %v362_v49, -1e+30  ;;  %v381_v55 = vsel %vm377_vm0, %v363_v27, -1e+30  ;;  %v1794_v4 = vpop.eup %1793  ;;  %v1249_v24 = vpack.c.bf16 %v1239_v28, %v1238_v43 }
 0x493   :  { %v372_v26 = vpop.permute.xlu0 %371  ;;  %v1240_v36 = vmul.f32 %v1794_v4, %v2601_v45  ;;  %v1568_v45 = vld [vmem:[%s2837_s6 + $0x5] ss:$8 sm:$0x3] }
 0x494   :  { %vm376_vm1 = vcmp.eq.s32.totalorder %v372_v26, 1  ;;  %v398_v33 = vpop.permute.xlu1 %397  ;;  %v2675_v61 = vrot.slane %v1568_v45, %v2139_v46 }
 0x495   :  { %v378_v60 = vsel %vm376_vm1, %v360_v57, -1e+30  ;;  %v379_v10 = vsel %vm376_vm1, %v361_v29, -1e+30  ;;  %vm402_vm4 = vcmp.eq.s32.totalorder %v398_v33, 1 }
 0x496   :  { %v382_v47 = vmax.f32 %v378_v60, %v380_v31  ;;  %v389_v52 = vmax.f32 %v379_v10, %v381_v55  ;;  %v404_v6 = vsel %vm402_vm4, %v360_v57, -1e+30  ;;  %v405_v53 = vsel %vm402_vm4, %v361_v29, -1e+30 }
 0x498   :  { %v383_v3 = vrot.slane %v382_v47, 4  ;;  %v390_v8 = vrot.slane %v389_v52, 4  ;;  %1342 = vmatmul.mubr.bf16.gmra.mrb[20].mxu0 %v1247_v17  ;;  %v401_v62 = vpop.permute.xlu1 %400 }
 0x499   :  { %vm403_vm5 = vcmp.eq.s32.totalorder %v401_v62, 1  ;;  %1351 = vmatprep.mubr.bf16.mxu0 %v2868_v56 }
 0x49a   :  { %v384_v7 = vmax.f32 %v382_v47, %v383_v3  ;;  %v391_v13 = vmax.f32 %v389_v52, %v390_v8  ;;  %v406_v25 = vsel %vm403_vm5, %v362_v49, -1e+30  ;;  %v407_v63 = vsel %vm403_vm5, %v363_v27, -1e+30  ;;  %v1796_v49 = vpop.eup %1795 }
 0x49b   :  { %v408_v19 = vmax.f32 %v404_v6, %v406_v25  ;;  %v415_v22 = vmax.f32 %v405_v53, %v407_v63  ;;  %v1241_v42 = vmul.f32 %v1796_v49, %v2606_v35  ;;  %v1798_v31 = vpop.eup %1797  ;;  %v2672_v35 = vrot.slane %v1568_v45, %v2867_v51 }
 0x49c   :  { %v385_v11 = vrot.slane %v384_v7, 2  ;;  %v392_v18 = vrot.slane %v391_v13, 2  ;;  %v1800_v16 = vpop.eup %1799  ;;  %v1242_v55 = vmul.f32 %v1798_v31, %v2611_v50 }
 0x49d   :  { %v409_v15 = vrot.slane %v408_v19, 4  ;;  %v416_v14 = vrot.slane %v415_v22, 4  ;;  %v1250_v33 = vpack.c.bf16 %v1241_v42, %v1240_v36  ;;  %v1243_v60 = vmul.f32 %v1800_v16, %v2616_v0 }
 0x49e   :  { %v386_v21 = vmax.f32 %v384_v7, %v385_v11  ;;  %v393_v59 = vmax.f32 %v391_v13, %v392_v18 }
 0x49f   :  { %v410_v48 = vmax.f32 %v408_v19, %v409_v15  ;;  %v417_v39 = vmax.f32 %v415_v22, %v416_v14  ;;  %v1251_v10 = vpack.c.bf16 %v1243_v60, %v1242_v55 }
 0x4a0   :  { %1352 = vmatmul.mubr.bf16.gmra.mrb[24].mxu0 %v1248_v34  ;;  %v387_v30 = vrot.slane %v386_v21, 1  ;;  %v394_v38 = vrot.slane %v393_v59, 1 }
 0x4a1   :  { %v411_v12 = vrot.slane %v410_v48, 2  ;;  %v418_v41 = vrot.slane %v417_v39, 2  ;;  %1361 = vmatprep.mubr.bf16.mxu0 %v2868_v56 }
 0x4a2   :  { %v388_v1 = vmax.f32 %v386_v21, %v387_v30  ;;  %v395_v32 = vmax.f32 %v393_v59, %v394_v38 }
 0x4a3   :  { %v412_v58 = vmax.f32 %v410_v48, %v411_v12  ;;  %v419_v2 = vmax.f32 %v417_v39, %v418_v41 }
 0x4a5   :  { %v413_v40 = vrot.slane %v412_v58, 1  ;;  %v420_v54 = vrot.slane %v419_v2, 1 }
 0x4a7   :  { %v414_v57 = vmax.f32 %v412_v58, %v413_v40  ;;  %v421_v44 = vmax.f32 %v419_v2, %v420_v54 }
 0x4a8   :  { %1362 = vmatmul.mubr.bf16.gmra.mrb[28].mxu0 %v1249_v24 }
 0x4a9   :  { %v2659_v5 = vsel %vm422_vm10, %v388_v1, %v414_v57  ;;  %v424_v29 = vsel %vm422_vm10, %v395_v32, %v421_v44  ;;  %1371 = vmatprep.mubr.bf16.mxu0 %v2868_v56 }
 0x4aa   :  { %v1457_v27 = vpack.c.bf16 %v424_v29, %v424_v29  ;;  %v427_v26 = vcombine.low %v2659_v5, %v424_v29 }
 0x4ac   :  { %1506 = vmatprep.mubr.bf16.mxu1 %v1457_v27  ;;  %1565 = vst.sshfl [vmem:[#allocation4] sm:$0x33 pattern:$0x76325410] %v427_v26 }
 0x4b0   :  { %1372 = vmatmul.mubr.bf16.gmra.mrb[32].mxu0 %v1250_v33 }
 0x4b1   :  { %1381 = vmatprep.mubr.bf16.mxu0 %v2868_v56 }
 0x4b8   :  { %1382 = vmatmul.mubr.bf16.gmra.mrb[36].mxu0 %v1251_v10 }
 0x553   :  { %v1313_v47 = vpop.f32.mrb[8].mxu0 }
 0x554   :  { %v1314_v52 = vadd.f32 %v1313_v47, %v2672_v35  ;;  %v1315_v56 = vpop.f32.mrb[9].mxu0 }
 0x555   :  { %v1316_v50 = vadd.f32 %v1315_v56, %v2675_v61  ;;  %v1317_v17 = vpop.f32.mrb[10].mxu0 }
 0x556   :  { %v1392_v0 = vmax.f32 %v1314_v52, 0.0  ;;  %v1318_v3 = vadd.f32 %v1317_v17, %v2672_v35  ;;  %v1319_v8 = vpop.f32.mrb[11].mxu0 }
 0x557   :  { %v1393_v62 = vmax.f32 %v1316_v50, 0.0  ;;  %v1320_v9 = vadd.f32 %v1319_v8, %v2675_v61 }
 0x558   :  { %1424 = vst [vmem:[%s2841_s10] sm:$0xff] %v1392_v0  ;;  %v1394_v46 = vmax.f32 %v1318_v3, 0.0 }
 0x559   :  { %1425 = vst [vmem:[%s2841_s10 + $0x8] sm:$0xff] %v1393_v62  ;;  %v1395_v51 = vmax.f32 %v1320_v9, 0.0 }
 0x55a   :  { %1426 = vst [vmem:[%s2841_s10 + $0x10] sm:$0xff] %v1394_v46  ;;  %v1458_v6 = vpack.c.bf16 %v1394_v46, %v1392_v0 }
 0x55b   :  { %1427 = vst [vmem:[%s2841_s10 + $0x18] sm:$0xff] %v1395_v51  ;;  %v1459_v53 = vpack.c.bf16 %v1395_v51, %v1393_v62  ;;  %v1323_v23 = vpop.f32.mrb[12].mxu0 }
 0x55c   :  { %v1324_v7 = vadd.f32 %v1323_v23, %v2672_v35  ;;  %v1325_v13 = vpop.f32.mrb[13].mxu0 }
 0x55d   :  { %v1326_v25 = vadd.f32 %v1325_v13, %v2675_v61  ;;  %v1327_v63 = vpop.f32.mrb[14].mxu0  ;;  %1474 = vmatprep.subr.bf16.mxu1 %v1459_v53 }
 0x55e   :  { %v1396_v19 = vmax.f32 %v1324_v7, 0.0  ;;  %v1328_v22 = vadd.f32 %v1327_v63, %v2672_v35  ;;  %v1329_v11 = vpop.f32.mrb[15].mxu0  ;;  %1475 = vmatpush1.bf16.xpose.msra.mxu1 %v1458_v6 }
 0x55f   :  { %v1397_v18 = vmax.f32 %v1326_v25, 0.0  ;;  %v1330_v15 = vadd.f32 %v1329_v11, %v2675_v61 }
 0x560   :  { %1428 = vst [vmem:[%s2841_s10 + $0x20] sm:$0xff] %v1396_v19  ;;  %v1398_v14 = vmax.f32 %v1328_v22, 0.0 }
 0x561   :  { %1429 = vst [vmem:[%s2841_s10 + $0x28] sm:$0xff] %v1397_v18  ;;  %v1399_v20 = vmax.f32 %v1330_v15, 0.0 }
 0x562   :  { %1430 = vst [vmem:[%s2841_s10 + $0x30] sm:$0xff] %v1398_v14  ;;  %v1460_v34 = vpack.c.bf16 %v1398_v14, %v1396_v19 }
 0x563   :  { %1431 = vst [vmem:[%s2841_s10 + $0x38] sm:$0xff] %v1399_v20  ;;  %v1461_v37 = vpack.c.bf16 %v1399_v20, %v1397_v18  ;;  %v1333_v21 = vpop.f32.mrb[16].mxu0 }
 0x564   :  { %v1334_v59 = vadd.f32 %v1333_v21, %v2672_v35  ;;  %v1335_v48 = vpop.f32.mrb[17].mxu0 }
 0x565   :  { %v1336_v39 = vadd.f32 %v1335_v48, %v2675_v61  ;;  %v1337_v12 = vpop.f32.mrb[18].mxu0  ;;  %1476 = vmatprep.subr.bf16.mxu1 %v1461_v37 }
 0x566   :  { %v1400_v41 = vmax.f32 %v1334_v59, 0.0  ;;  %v1338_v43 = vadd.f32 %v1337_v12, %v2672_v35  ;;  %v1339_v28 = vpop.f32.mrb[19].mxu0  ;;  %1477 = vmatpush1.bf16.xpose.msra.mxu1 %v1460_v34 }
 0x567   :  { %v1401_v30 = vmax.f32 %v1336_v39, 0.0  ;;  %v1340_v38 = vadd.f32 %v1339_v28, %v2675_v61 }
 0x568   :  { %1432 = vst [vmem:[%s2841_s10 + $0x40] sm:$0xff] %v1400_v41  ;;  %v1402_v58 = vmax.f32 %v1338_v43, 0.0 }
 0x569   :  { %1433 = vst [vmem:[%s2841_s10 + $0x48] sm:$0xff] %v1401_v30  ;;  %v1403_v2 = vmax.f32 %v1340_v38, 0.0 }
 0x56a   :  { %1434 = vst [vmem:[%s2841_s10 + $0x50] sm:$0xff] %v1402_v58  ;;  %v1462_v40 = vpack.c.bf16 %v1402_v58, %v1400_v41 }
 0x56b   :  { %1435 = vst [vmem:[%s2841_s10 + $0x58] sm:$0xff] %v1403_v2  ;;  %v1463_v54 = vpack.c.bf16 %v1403_v2, %v1401_v30  ;;  %v1343_v4 = vpop.f32.mrb[20].mxu0 }
 0x56c   :  { %v1344_v24 = vadd.f32 %v1343_v4, %v2672_v35  ;;  %v1345_v49 = vpop.f32.mrb[21].mxu0 }
 0x56d   :  { %v1346_v1 = vadd.f32 %v1345_v49, %v2675_v61  ;;  %v1347_v32 = vpop.f32.mrb[22].mxu0  ;;  %1478 = vmatprep.subr.bf16.mxu1 %v1463_v54 }
 0x56e   :  { %v1404_v57 = vmax.f32 %v1344_v24, 0.0  ;;  %v1348_v44 = vadd.f32 %v1347_v32, %v2672_v35  ;;  %v1349_v29 = vpop.f32.mrb[23].mxu0  ;;  %1479 = vmatpush1.bf16.xpose.msra.mxu1 %v1462_v40 }
 0x56f   :  { %v1405_v27 = vmax.f32 %v1346_v1, 0.0  ;;  %v1350_v36 = vadd.f32 %v1349_v29, %v2675_v61  ;;  %v1456_v29 = vpack.c.bf16 %v2659_v5, %v2659_v5 }
 0x570   :  { %1436 = vst [vmem:[%s2841_s10 + $0x60] sm:$0xff] %v1404_v57  ;;  %v1406_v42 = vmax.f32 %v1348_v44, 0.0 }
 0x571   :  { %1437 = vst [vmem:[%s2841_s10 + $0x68] sm:$0xff] %v1405_v27  ;;  %v1407_v26 = vmax.f32 %v1350_v36, 0.0 }
 0x572   :  { %1438 = vst [vmem:[%s2841_s10 + $0x70] sm:$0xff] %v1406_v42  ;;  %v1464_v31 = vpack.c.bf16 %v1406_v42, %v1404_v57 }
 0x573   :  { %1439 = vst [vmem:[%s2841_s10 + $0x78] sm:$0xff] %v1407_v26  ;;  %v1465_v33 = vpack.c.bf16 %v1407_v26, %v1405_v27  ;;  %v1353_v16 = vpop.f32.mrb[24].mxu0 }
 0x574   :  { %v1354_v55 = vadd.f32 %v1353_v16, %v2672_v35  ;;  %v1355_v60 = vpop.f32.mrb[25].mxu0 }
 0x575   :  { %v1356_v10 = vadd.f32 %v1355_v60, %v2675_v61  ;;  %v1357_v45 = vpop.f32.mrb[26].mxu0  ;;  %1480 = vmatprep.subr.bf16.mxu1 %v1465_v33 }
 0x576   :  { %v1408_v47 = vmax.f32 %v1354_v55, 0.0  ;;  %v1358_v52 = vadd.f32 %v1357_v45, %v2672_v35  ;;  %v1359_v56 = vpop.f32.mrb[27].mxu0  ;;  %1481 = vmatpush1.bf16.xpose.msra.mxu1 %v1464_v31 }
 0x577   :  { %v1409_v50 = vmax.f32 %v1356_v10, 0.0  ;;  %v1360_v17 = vadd.f32 %v1359_v56, %v2675_v61 }
 0x578   :  { %1440 = vst [vmem:[%s2841_s10 + $0x80] sm:$0xff] %v1408_v47  ;;  %v1410_v0 = vmax.f32 %v1358_v52, 0.0 }
 0x579   :  { %1441 = vst [vmem:[%s2841_s10 + $0x88] sm:$0xff] %v1409_v50  ;;  %v1411_v3 = vmax.f32 %v1360_v17, 0.0 }
 0x57a   :  { %1442 = vst [vmem:[%s2841_s10 + $0x90] sm:$0xff] %v1410_v0  ;;  %v1466_v8 = vpack.c.bf16 %v1410_v0, %v1408_v47 }
 0x57b   :  { %1443 = vst [vmem:[%s2841_s10 + $0x98] sm:$0xff] %v1411_v3  ;;  %v1467_v62 = vpack.c.bf16 %v1411_v3, %v1409_v50  ;;  %v1363_v9 = vpop.f32.mrb[28].mxu0 }
 0x57c   :  { %v1364_v46 = vadd.f32 %v1363_v9, %v2672_v35  ;;  %v1365_v51 = vpop.f32.mrb[29].mxu0 }
 0x57d   :  { %v1366_v6 = vadd.f32 %v1365_v51, %v2675_v61  ;;  %v1367_v53 = vpop.f32.mrb[30].mxu0  ;;  %1482 = vmatprep.subr.bf16.mxu1 %v1467_v62 }
 0x57e   :  { %v1412_v23 = vmax.f32 %v1364_v46, 0.0  ;;  %v1368_v7 = vadd.f32 %v1367_v53, %v2672_v35  ;;  %v1369_v13 = vpop.f32.mrb[31].mxu0  ;;  %1483 = vmatpush1.bf16.xpose.msra.mxu1 %v1466_v8 }
 0x57f   :  { %v1413_v25 = vmax.f32 %v1366_v6, 0.0  ;;  %v1370_v63 = vadd.f32 %v1369_v13, %v2675_v61 }
 0x580   :  { %1444 = vst [vmem:[%s2841_s10 + $0xa0] sm:$0xff] %v1412_v23  ;;  %v1414_v19 = vmax.f32 %v1368_v7, 0.0 }
 0x581   :  { %1445 = vst [vmem:[%s2841_s10 + $0xa8] sm:$0xff] %v1413_v25  ;;  %v1415_v22 = vmax.f32 %v1370_v63, 0.0 }
 0x582   :  { %1446 = vst [vmem:[%s2841_s10 + $0xb0] sm:$0xff] %v1414_v19  ;;  %v1468_v11 = vpack.c.bf16 %v1414_v19, %v1412_v23 }
 0x583   :  { %1447 = vst [vmem:[%s2841_s10 + $0xb8] sm:$0xff] %v1415_v22  ;;  %v1469_v18 = vpack.c.bf16 %v1415_v22, %v1413_v25  ;;  %v1373_v15 = vpop.f32.mrb[32].mxu0 }
 0x584   :  { %v1374_v14 = vadd.f32 %v1373_v15, %v2672_v35  ;;  %v1375_v20 = vpop.f32.mrb[33].mxu0 }
 0x585   :  { %v1376_v34 = vadd.f32 %v1375_v20, %v2675_v61  ;;  %v1377_v37 = vpop.f32.mrb[34].mxu0  ;;  %1484 = vmatprep.subr.bf16.mxu1 %v1469_v18 }
 0x586   :  { %v1416_v21 = vmax.f32 %v1374_v14, 0.0  ;;  %v1378_v59 = vadd.f32 %v1377_v37, %v2672_v35  ;;  %v1379_v48 = vpop.f32.mrb[35].mxu0  ;;  %1485 = vmatpush1.bf16.xpose.msra.mxu1 %v1468_v11 }
 0x587   :  { %v1417_v39 = vmax.f32 %v1376_v34, 0.0  ;;  %v1380_v12 = vadd.f32 %v1379_v48, %v2675_v61 }
 0x588   :  { %1448 = vst [vmem:[%s2841_s10 + $0xc0] sm:$0xff] %v1416_v21  ;;  %v1418_v41 = vmax.f32 %v1378_v59, 0.0 }
 0x589   :  { %1449 = vst [vmem:[%s2841_s10 + $0xc8] sm:$0xff] %v1417_v39  ;;  %v1419_v43 = vmax.f32 %v1380_v12, 0.0 }
 0x58a   :  { %1450 = vst [vmem:[%s2841_s10 + $0xd0] sm:$0xff] %v1418_v41  ;;  %v1470_v28 = vpack.c.bf16 %v1418_v41, %v1416_v21 }
 0x58b   :  { %1451 = vst [vmem:[%s2841_s10 + $0xd8] sm:$0xff] %v1419_v43  ;;  %v1471_v30 = vpack.c.bf16 %v1419_v43, %v1417_v39  ;;  %v1383_v38 = vpop.f32.mrb[36].mxu0 }
 0x58c   :  { %v1384_v58 = vadd.f32 %v1383_v38, %v2672_v35  ;;  %v1385_v2 = vpop.f32.mrb[37].mxu0 }
 0x58d   :  { %v1386_v40 = vadd.f32 %v1385_v2, %v2675_v61  ;;  %v1387_v54 = vpop.f32.mrb[38].mxu0  ;;  %1486 = vmatprep.subr.bf16.mxu1 %v1471_v30 }
 0x58e   :  { %v1420_v4 = vmax.f32 %v1384_v58, 0.0  ;;  %v1388_v24 = vadd.f32 %v1387_v54, %v2672_v35  ;;  %v1389_v49 = vpop.f32.mrb[39].mxu0  ;;  %1487 = vmatpush1.bf16.xpose.msra.mxu1 %v1470_v28 }
 0x58f   :  { %v1421_v1 = vmax.f32 %v1386_v40, 0.0  ;;  %v1390_v32 = vadd.f32 %v1389_v49, %v2675_v61 }
 0x590   :  { %1452 = vst [vmem:[%s2841_s10 + $0xe0] sm:$0xff] %v1420_v4  ;;  %v1422_v57 = vmax.f32 %v1388_v24, 0.0 }
 0x591   :  { %1453 = vst [vmem:[%s2841_s10 + $0xe8] sm:$0xff] %v1421_v1  ;;  %v1423_v44 = vmax.f32 %v1390_v32, 0.0 }
 0x592   :  { %1454 = vst [vmem:[%s2841_s10 + $0xf0] sm:$0xff] %v1422_v57  ;;  %v1472_v35 = vpack.c.bf16 %v1422_v57, %v1420_v4 }
 0x593   :  { %1455 = vst [vmem:[%s2841_s10 + $0xf8] sm:$0xff] %v1423_v44  ;;  %v1473_v61 = vpack.c.bf16 %v1423_v44, %v1421_v1 }
 0x595   :  { %1488 = vmatprep.subr.bf16.mxu1 %v1473_v61 }
 0x596   :  { %1489 = vmatpush1.bf16.xpose.msra.mxu1 %v1472_v35 }
 0x59d   :  { %1507 = vmatmul.mubr.bf16.vlgmr.msra.gmra.mrb[36].mxu1 %v1456_v29 }
 0x59e   :  { %1812 = shalt.err (!%p1809_p4)
}
 0x59f   :  { %s1813_s10 = scalar_lea.hbm %s2840_s9, 64 }
 0x5a0   :  { %p1814_p5 = scmp.ne.s32.totalorder %s2840_s9, %s1813_s10  ;;  %p1817_p6 = scmp.lt.u32.totalorder %s1813_s10, %s2840_s9 }
 0x5a2   :  { %p1819_p7 = pnand %p1817_p6, %p1814_p5 }
 0x5a4   :  { %1822 = shalt.err (!%p1819_p7)
}
 0x5a5   :  { %1534 = dma.vmem_to_hbm [thread:$0]  %s1532_s22, 64, %s2840_s9, [#allocation5]  }
 0x5a6   :  { %s1855_s11 = smov [#allocation2]  }
 0x5a7   :  { %s1521_s3 = sshll.u32 %s1855_s11, 4  ;;  %s1522_s3 = int_to_ptr.vmem [resolvable:$true] %s1521_s3 }
 0x5a8   :  { %s1823_s4 = scalar_lea.vmem %s1522_s3, 32  ;;  %p1828_p9 = scmp.lt.s32.totalorder %s1522_s3, %s1522_s3 }
 0x5a9   :  { %p1824_p8 = scmp.ne.s32.totalorder %s1522_s3, %s1823_s4  ;;  %p1829_p10 = scmp.lt.s32.totalorder %s1823_s4, %s1823_s4 }
 0x5ab   :  { %p1830_p11 = por %p1829_p10, %p1828_p9 }
 0x5ad   :  { %p1831_p12 = pnand %p1830_p11, %p1824_p8 }
 0x670   :  { %v1508_v5 = vpop.f32.mrb[36].mxu1 }
 0x671   :  { %1514 = vst [vmem:[#allocation2] sm:$0x3] %v1508_v5  ;;  %v1510_v27 = vpop.f32.mrb[37].mxu1 }
 0x672   :  { %v1511_v36 = vpop.f32.mrb[38].mxu1 }
 0x673   :  { %1834 = shalt.err (!%p1831_p12)
}
 0x674   :  { %s1835_s7 = scalar_lea.hbm %s2839_s8, 32 }
 0x675   :  { %p1836_p13 = scmp.ne.s32.totalorder %s2839_s8, %s1835_s7  ;;  %p1839_p0 = scmp.lt.u32.totalorder %s1835_s7, %s2839_s8 }
 0x677   :  { %p1841_p1 = pnand %p1839_p0, %p1836_p13 }
 0x679   :  { %1844 = shalt.err (!%p1841_p1)
}
 0x67a   :  { %1524 = dma.vmem_to_hbm [thread:$0]  %s1522_s3, 32, %s2839_s8, [#allocation3]   ;;  %v1512_v42 = vpop.f32.mrb[39].mxu1 }
 0x67b   :  { %1845 = dma.done.wait [#allocation3], 32  }
 0x67c   :  { %1846 = vsyncadd [#allocation3], 4294967264 }
 0x67d   :  { %1847 = dma.done.wait [#allocation5], 64  }
 0x67e   :  { %1848 = vsyncadd [#allocation5], 4294967232 }
 0x67f   :  { %1545 = vsyncpa [#allocation3], 1 }
 0x680   :  { %1546 = vsyncpa [#allocation5], 1 }

</bundles_post_ra>
